<compile_context>
chip_gen: v5e
topology: v5e:2x2
jax: 0.10.0
libtpu: 0.0.40
codegen_flags: <defaults>
</compile_context>

<pallas_src>
import functools

import jax
import jax.numpy as jnp
from jax import lax
from jax.experimental import pallas as pl
from jax.experimental.pallas import tpu as pltpu


CFG = dict(vocab=100, hidden=32, heads=2, layers=2,
           intermediate=64, max_pos=64, out_dim=3)
LN_EPS = 1e-12


# ----------------------------- in-kernel helpers -----------------------------

def _layernorm(x, g, b, eps):
    mu = jnp.mean(x, axis=-1, keepdims=True)
    xc = x - mu
    var = jnp.mean(xc * xc, axis=-1, keepdims=True)
    return xc * jax.lax.rsqrt(var + eps) * g + b


def _erf(x):
    # Abramowitz & Stegun 7.1.26 (|err| < 1.5e-7): keeps BERT's exact-erf GELU
    # semantics.  The divide is replaced by an EUP approx reciprocal so the
    # VALU only sees muls/adds/selects; exp also runs on the EUP.
    a1, a2, a3, a4, a5 = (0.254829592, -0.284496736, 1.421413741,
                          -1.453152027, 1.061405429)
    p = 0.3275911
    sgn = jnp.where(x < 0.0, -1.0, 1.0)
    ax = jnp.abs(x)
    t = pl.reciprocal(1.0 + p * ax, approx=True)
    poly = ((((a5 * t + a4) * t + a3) * t + a2) * t + a1) * t
    return sgn * (1.0 - poly * jnp.exp(-ax * ax))


def _gelu_exact(x):
    return 0.5 * x * (1.0 + _erf(x * 0.7071067811865476))


def _mm(a, w_ref, b_ref):
    # bf16 MXU inputs (weights stored bf16), f32 accumulate + f32 epilogue.
    return jnp.dot(a.astype(jnp.bfloat16), w_ref[...],
                   preferred_element_type=jnp.float32) + b_ref[...]


# ------------------------------ fused BERT kernel -----------------------------

def _bert_kernel(ids_ref, *refs, B, S, H, nh, hd, n_layers, eps):
    it = iter(refs)
    wemb_ref = next(it)                       # (V, H)  f32 word embeddings
    pt_ref = next(it)                         # (P, H)  f32 pos + type-0 emb
    eg_ref = next(it); eb_ref = next(it)      # (1, H)  embedding LayerNorm
    mask_ref = next(it)                       # (B*S, B*S) f32 additive mask
    layers = [tuple(next(it) for _ in range(12)) for _ in range(n_layers)]
    fcw_ref = next(it); fcb_ref = next(it)    # (H, O) bf16, (1, O) f32
    o_ref = next(it)                          # (B, O) f32 output
    x_scr = next(it)                          # (B*S, H) f32 scratch

    # ---- fused embedding gather: word + position + token-type(0) ----
    for b in range(B):                        # static unroll, B*S rows total
        for s in range(S):
            row = wemb_ref[pl.ds(ids_ref[b, s], 1), :] + pt_ref[s:s + 1, :]
            x_scr[b * S + s:b * S + s + 1, :] = row
    x = _layernorm(x_scr[...], eg_ref[...], eb_ref[...], eps)

    # HF-style additive mask (0 keep / -1e4 drop), already block-diagonal over
    # batches so the whole batch can attend in one M=B*S matmul per head.
    mask_add = mask_ref[...]

    for (wqkv, bqkv, wo, bo, ln1g, ln1b,
         wi, bi, wo2, bo2, ln2g, ln2b) in layers:        # static layer unroll
        # Fused QKV projection; 1/sqrt(hd) pre-folded into the Q columns.
        qkv = _mm(x, wqkv, bqkv)                         # (B*S, 3H) f32

        ctxs = []
        for j in range(nh):                              # static unroll/heads
            q = qkv[:, j * hd:(j + 1) * hd]
            k = qkv[:, H + j * hd:H + (j + 1) * hd]
            v = qkv[:, 2 * H + j * hd:2 * H + (j + 1) * hd]
            # contract on dim 1 of both operands: no XLU transpose of K.
            s_ = lax.dot_general(q, k, (((1,), (1,)), ((), ())),
                                 preferred_element_type=jnp.float32)
            s_ = s_ + mask_add
            s_ = s_ - jnp.max(s_, axis=-1, keepdims=True)
            p = jnp.exp(s_)
            p = p * pl.reciprocal(jnp.sum(p, axis=-1, keepdims=True),
                                  approx=True)
            ctxs.append(jnp.dot(p, v, preferred_element_type=jnp.float32))
        ctx = jnp.concatenate(ctxs, axis=-1)             # (B*S, H) merged heads
        attn = _mm(ctx, wo, bo)                          # one (BS,H)x(H,H) dot

        h1 = _layernorm(x + attn, ln1g[...], ln1b[...], eps)   # fused residual
        ffn = _gelu_exact(_mm(h1, wi, bi))
        ffn = _mm(ffn, wo2, bo2)
        x = _layernorm(h1 + ffn, ln2g[...], ln2b[...], eps)    # fused residual

    # ---- classifier head: slice CLS rows BEFORE the fc matmul ----
    cls = jnp.concatenate([x[b * S:b * S + 1, :] for b in range(B)], axis=0)
    o_ref[...] = jax.nn.sigmoid(_mm(cls, fcw_ref, fcb_ref))   # (B, O)


def fused_bert_call(ids, mask_add, fp, cfg):
    """Single pallas_call running embeddings + all layers + head."""
    B, S = ids.shape
    H = cfg["hidden"]
    nh = cfg["heads"]
    hd = H // nh
    O = cfg["out_dim"]
    n_layers = len(fp["layers"])

    inputs = [fp["word_emb"], fp["pos_type"], fp["emb_ln_g"], fp["emb_ln_b"],
              mask_add]
    for lw in fp["layers"]:
        inputs += [lw["wqkv"], lw["bqkv"], lw["wo"], lw["bo"],
                   lw["ln1g"], lw["ln1b"], lw["wi"], lw["bi"],
                   lw["wo2"], lw["bo2"], lw["ln2g"], lw["ln2b"]]
    inputs += [fp["fc_w"], fp["fc_b"]]

    def full_spec(arr):
        # full-array block, fetched once for the single grid step
        return pl.BlockSpec(arr.shape, lambda i, ids_ref: (0,) * arr.ndim)

    grid_spec = pltpu.PrefetchScalarGridSpec(
        num_scalar_prefetch=1,                 # input_ids -> SMEM
        grid=(1,),                             # whole batch in one step
        in_specs=[full_spec(a) for a in inputs],
        out_specs=pl.BlockSpec((B, O), lambda i, ids_ref: (0, 0)),
        scratch_shapes=[pltpu.VMEM((B * S, H), jnp.float32)],
    )
    kernel = functools.partial(_bert_kernel, B=B, S=S, H=H, nh=nh, hd=hd,
                               n_layers=n_layers, eps=LN_EPS)
    return pl.pallas_call(
        kernel,
        out_shape=jax.ShapeDtypeStruct((B, O), jnp.float32),
        grid_spec=grid_spec,
        compiler_params=pltpu.CompilerParams(
            dimension_semantics=("arbitrary",)),
    )(ids, *inputs)


# ------------------------------ parameters -----------------------------------

def init_params(key, cfg):
    H, I, V, P, O = (cfg["hidden"], cfg["intermediate"], cfg["vocab"],
                     cfg["max_pos"], cfg["out_dim"])

    def nrm(k, shape):
        return (0.02 * jax.random.normal(k, shape)).astype(jnp.float32)

    keys = iter(jax.random.split(key, 8 + 10 * cfg["layers"]))
    params = {
        "word_emb": nrm(next(keys), (V, H)),
        "pos_emb": nrm(next(keys), (P, H)),
        "type_emb": nrm(next(keys), (2, H)),
        "emb_ln_g": jnp.ones((H,), jnp.float32),
        "emb_ln_b": jnp.zeros((H,), jnp.float32),
        "fc_w": nrm(next(keys), (H, O)),
        "fc_b": jnp.zeros((O,), jnp.float32),
        "layers": [],
    }
    for _ in range(cfg["layers"]):
        params["layers"].append({
            "wq": nrm(next(keys), (H, H)), "bq": jnp.zeros((H,), jnp.float32),
            "wk": nrm(next(keys), (H, H)), "bk": jnp.zeros((H,), jnp.float32),
            "wv": nrm(next(keys), (H, H)), "bv": jnp.zeros((H,), jnp.float32),
            "wo": nrm(next(keys), (H, H)), "bo": jnp.zeros((H,), jnp.float32),
            "ln1_g": jnp.ones((H,), jnp.float32),
            "ln1_b": jnp.zeros((H,), jnp.float32),
            "wi": nrm(next(keys), (H, I)), "bi": jnp.zeros((I,), jnp.float32),
            "wo2": nrm(next(keys), (I, H)), "bo2": jnp.zeros((H,), jnp.float32),
            "ln2_g": jnp.ones((H,), jnp.float32),
            "ln2_b": jnp.zeros((H,), jnp.float32),
        })
    return params


def fuse_params(params, cfg):
    """Offline prep: fuse Q|K|V, fold softmax scale into Q (weight AND bias),
    pre-add pos+type embeddings, cast matmul weights bf16, reshape biases /
    LN params to (1, N) lane rows."""
    H = cfg["hidden"]
    hd = H // cfg["heads"]
    scale = float(hd) ** -0.5
    bf16 = jnp.bfloat16
    # TODO(synk): token_type id fixed to 0 (matches token_type_ids=None in HF).
    fused = {
        "word_emb": params["word_emb"],
        "pos_type": params["pos_emb"] + params["type_emb"][0][None, :],
        "emb_ln_g": params["emb_ln_g"].reshape(1, H),
        "emb_ln_b": params["emb_ln_b"].reshape(1, H),
        "fc_w": params["fc_w"].astype(bf16),
        "fc_b": params["fc_b"].reshape(1, -1),
        "layers": [],
    }
    for lyr in params["layers"]:
        fused["layers"].append({
            "wqkv": jnp.concatenate(
                [lyr["wq"] * scale, lyr["wk"], lyr["wv"]], axis=1).astype(bf16),
            "bqkv": jnp.concatenate(
                [lyr["bq"] * scale, lyr["bk"], lyr["bv"]]).reshape(1, 3 * H),
            "wo": lyr["wo"].astype(bf16),
            "bo": lyr["bo"].reshape(1, H),
            "ln1g": lyr["ln1_g"].reshape(1, H),
            "ln1b": lyr["ln1_b"].reshape(1, H),
            "wi": lyr["wi"].astype(bf16),
            "bi": lyr["bi"].reshape(1, -1),
            "wo2": lyr["wo2"].astype(bf16),
            "bo2": lyr["bo2"].reshape(1, H),
            "ln2g": lyr["ln2_g"].reshape(1, H),
            "ln2b": lyr["ln2_b"].reshape(1, H),
        })
    return fused


# ------------------------------ forward ---------------------------------------

def bert_classifier_forward(fp, x, cfg):
    # x: [B, 2, S] int — x[:,0,:] = input_ids, x[:,1,:] = attention_mask
    ids = x[:, 0, :].astype(jnp.int32)
    am = x[:, 1, :].astype(jnp.float32)
    B, S = ids.shape

    # Block-diagonal HF-style additive mask over the flattened (B*S) rows:
    # 0 where (same batch AND key not padded), else -1e4.  Cross-batch columns
    # underflow to exactly 0 after softmax, so one big attention matmul is
    # equivalent to per-batch attention.
    same = jnp.eye(B, dtype=jnp.float32)[:, None, :, None]        # (B,1,B,1)
    valid = am[None, None, :, :]                                   # (1,1,B,S)
    keep = jnp.broadcast_to(same * valid, (B, S, B, S))
    mask_add = ((1.0 - keep) * -10000.0).reshape(B * S, B * S)

    # The whole model (embeddings, both layers, CLS+fc+sigmoid) is ONE kernel.
    return fused_bert_call(ids, mask_add, fp, cfg)                 # (B, O)


if __name__ == "__main__":
    B, S = 2, 8
    key = jax.random.PRNGKey(0)
    k_param, k_ids = jax.random.split(key)

    params = init_params(k_param, CFG)
    fused = fuse_params(params, CFG)

    input_ids = jax.random.randint(k_ids, (B, S), 0, CFG["vocab"],
                                   dtype=jnp.int32)
    attention_mask = jnp.ones((B, S), jnp.int32).at[1, 6:].set(0)  # pad tail
    x = jnp.stack([input_ids, attention_mask], axis=1)             # [B, 2, S]

    fwd = jax.jit(functools.partial(bert_classifier_forward, cfg=CFG))
    out = fwd(fused, x)
    jax.block_until_ready(out)
    assert out.shape == (B, CFG["out_dim"])
    print("KERNEL_OK")
</pallas_src>

<mosaic_0001>
module attributes {stable_mosaic.version = 11 : i64} {
  func.func @_bert_kernel(%arg0: i32, %arg1: memref<2x8xi32, #tpu.memory_space<smem>>, %arg2: memref<100x32xf32, #tpu.memory_space<vmem>>, %arg3: memref<64x32xf32, #tpu.memory_space<vmem>>, %arg4: memref<1x32xf32, #tpu.memory_space<vmem>>, %arg5: memref<1x32xf32, #tpu.memory_space<vmem>>, %arg6: memref<16x16xf32, #tpu.memory_space<vmem>>, %arg7: memref<32x96xbf16, #tpu.memory_space<vmem>>, %arg8: memref<1x96xf32, #tpu.memory_space<vmem>>, %arg9: memref<32x32xbf16, #tpu.memory_space<vmem>>, %arg10: memref<1x32xf32, #tpu.memory_space<vmem>>, %arg11: memref<1x32xf32, #tpu.memory_space<vmem>>, %arg12: memref<1x32xf32, #tpu.memory_space<vmem>>, %arg13: memref<32x64xbf16, #tpu.memory_space<vmem>>, %arg14: memref<1x64xf32, #tpu.memory_space<vmem>>, %arg15: memref<64x32xbf16, #tpu.memory_space<vmem>>, %arg16: memref<1x32xf32, #tpu.memory_space<vmem>>, %arg17: memref<1x32xf32, #tpu.memory_space<vmem>>, %arg18: memref<1x32xf32, #tpu.memory_space<vmem>>, %arg19: memref<32x96xbf16, #tpu.memory_space<vmem>>, %arg20: memref<1x96xf32, #tpu.memory_space<vmem>>, %arg21: memref<32x32xbf16, #tpu.memory_space<vmem>>, %arg22: memref<1x32xf32, #tpu.memory_space<vmem>>, %arg23: memref<1x32xf32, #tpu.memory_space<vmem>>, %arg24: memref<1x32xf32, #tpu.memory_space<vmem>>, %arg25: memref<32x64xbf16, #tpu.memory_space<vmem>>, %arg26: memref<1x64xf32, #tpu.memory_space<vmem>>, %arg27: memref<64x32xbf16, #tpu.memory_space<vmem>>, %arg28: memref<1x32xf32, #tpu.memory_space<vmem>>, %arg29: memref<1x32xf32, #tpu.memory_space<vmem>>, %arg30: memref<1x32xf32, #tpu.memory_space<vmem>>, %arg31: memref<32x3xbf16, #tpu.memory_space<vmem>>, %arg32: memref<1x3xf32, #tpu.memory_space<vmem>>, %arg33: memref<2x3xf32, #tpu.memory_space<vmem>>, %arg34: memref<16x32xf32, #tpu.memory_space<vmem>>) attributes {dimension_semantics = [#tpu.dimension_semantics<arbitrary>], iteration_bounds = array<i64: 1>, scalar_prefetch = 1 : i64, scratch_operands = 1 : i64, tpu.core_type = #tpu.core_type<tc>, window_params = [{pipeline_mode = #tpu.pipeline_mode<synchronous>, transform_indices = @transform_0, window_bounds = array<i64: 100, 32>}, {pipeline_mode = #tpu.pipeline_mode<synchronous>, transform_indices = @transform_1, window_bounds = array<i64: 64, 32>}, {pipeline_mode = #tpu.pipeline_mode<synchronous>, transform_indices = @transform_2, window_bounds = array<i64: 1, 32>}, {pipeline_mode = #tpu.pipeline_mode<synchronous>, transform_indices = @transform_3, window_bounds = array<i64: 1, 32>}, {pipeline_mode = #tpu.pipeline_mode<synchronous>, transform_indices = @transform_4, window_bounds = array<i64: 16, 16>}, {pipeline_mode = #tpu.pipeline_mode<synchronous>, transform_indices = @transform_5, window_bounds = array<i64: 32, 96>}, {pipeline_mode = #tpu.pipeline_mode<synchronous>, transform_indices = @transform_6, window_bounds = array<i64: 1, 96>}, {pipeline_mode = #tpu.pipeline_mode<synchronous>, transform_indices = @transform_7, window_bounds = array<i64: 32, 32>}, {pipeline_mode = #tpu.pipeline_mode<synchronous>, transform_indices = @transform_8, window_bounds = array<i64: 1, 32>}, {pipeline_mode = #tpu.pipeline_mode<synchronous>, transform_indices = @transform_9, window_bounds = array<i64: 1, 32>}, {pipeline_mode = #tpu.pipeline_mode<synchronous>, transform_indices = @transform_10, window_bounds = array<i64: 1, 32>}, {pipeline_mode = #tpu.pipeline_mode<synchronous>, transform_indices = @transform_11, window_bounds = array<i64: 32, 64>}, {pipeline_mode = #tpu.pipeline_mode<synchronous>, transform_indices = @transform_12, window_bounds = array<i64: 1, 64>}, {pipeline_mode = #tpu.pipeline_mode<synchronous>, transform_indices = @transform_13, window_bounds = array<i64: 64, 32>}, {pipeline_mode = #tpu.pipeline_mode<synchronous>, transform_indices = @transform_14, window_bounds = array<i64: 1, 32>}, {pipeline_mode = #tpu.pipeline_mode<synchronous>, transform_indices = @transform_15, window_bounds = array<i64: 1, 32>}, {pipeline_mode = #tpu.pipeline_mode<synchronous>, transform_indices = @transform_16, window_bounds = array<i64: 1, 32>}, {pipeline_mode = #tpu.pipeline_mode<synchronous>, transform_indices = @transform_17, window_bounds = array<i64: 32, 96>}, {pipeline_mode = #tpu.pipeline_mode<synchronous>, transform_indices = @transform_18, window_bounds = array<i64: 1, 96>}, {pipeline_mode = #tpu.pipeline_mode<synchronous>, transform_indices = @transform_19, window_bounds = array<i64: 32, 32>}, {pipeline_mode = #tpu.pipeline_mode<synchronous>, transform_indices = @transform_20, window_bounds = array<i64: 1, 32>}, {pipeline_mode = #tpu.pipeline_mode<synchronous>, transform_indices = @transform_21, window_bounds = array<i64: 1, 32>}, {pipeline_mode = #tpu.pipeline_mode<synchronous>, transform_indices = @transform_22, window_bounds = array<i64: 1, 32>}, {pipeline_mode = #tpu.pipeline_mode<synchronous>, transform_indices = @transform_23, window_bounds = array<i64: 32, 64>}, {pipeline_mode = #tpu.pipeline_mode<synchronous>, transform_indices = @transform_24, window_bounds = array<i64: 1, 64>}, {pipeline_mode = #tpu.pipeline_mode<synchronous>, transform_indices = @transform_25, window_bounds = array<i64: 64, 32>}, {pipeline_mode = #tpu.pipeline_mode<synchronous>, transform_indices = @transform_26, window_bounds = array<i64: 1, 32>}, {pipeline_mode = #tpu.pipeline_mode<synchronous>, transform_indices = @transform_27, window_bounds = array<i64: 1, 32>}, {pipeline_mode = #tpu.pipeline_mode<synchronous>, transform_indices = @transform_28, window_bounds = array<i64: 1, 32>}, {pipeline_mode = #tpu.pipeline_mode<synchronous>, transform_indices = @transform_29, window_bounds = array<i64: 32, 3>}, {pipeline_mode = #tpu.pipeline_mode<synchronous>, transform_indices = @transform_30, window_bounds = array<i64: 1, 3>}, {pipeline_mode = #tpu.pipeline_mode<synchronous>, transform_indices = @transform_31, window_bounds = array<i64: 2, 3>}]} {
    %c0 = arith.constant 0 : index
    %c0_0 = arith.constant 0 : index
    %0 = memref.load %arg1[%c0, %c0_0] : memref<2x8xi32, #tpu.memory_space<smem>>
    %1 = arith.index_cast %0 : i32 to index
    %c0_1 = arith.constant 0 : index
    %2 = vector.load %arg2[%1, %c0_1] : memref<100x32xf32, #tpu.memory_space<vmem>>, vector<1x32xf32>
    %c0_2 = arith.constant 0 : index
    %c0_3 = arith.constant 0 : index
    %3 = vector.load %arg3[%c0_2, %c0_3] : memref<64x32xf32, #tpu.memory_space<vmem>>, vector<1x32xf32>
    %4 = arith.addf %2, %3 : vector<1x32xf32>
    %c0_4 = arith.constant 0 : index
    %c0_5 = arith.constant 0 : index
    %5 = vector.load %arg34[%c0_4, %c0_5] : memref<16x32xf32, #tpu.memory_space<vmem>>, vector<1x32xf32>
    tpu.vector_store %arg34[%c0_4, %c0_5], %4 {strides = array<i32>} : memref<16x32xf32, #tpu.memory_space<vmem>>, vector<1x32xf32>,
    %c0_6 = arith.constant 0 : index
    %c1 = arith.constant 1 : index
    %6 = memref.load %arg1[%c0_6, %c1] : memref<2x8xi32, #tpu.memory_space<smem>>
    %7 = arith.index_cast %6 : i32 to index
    %c0_7 = arith.constant 0 : index
    %8 = vector.load %arg2[%7, %c0_7] : memref<100x32xf32, #tpu.memory_space<vmem>>, vector<1x32xf32>
    %c1_8 = arith.constant 1 : index
    %c0_9 = arith.constant 0 : index
    %9 = vector.load %arg3[%c1_8, %c0_9] : memref<64x32xf32, #tpu.memory_space<vmem>>, vector<1x32xf32>
    %10 = arith.addf %8, %9 : vector<1x32xf32>
    %c1_10 = arith.constant 1 : index
    %c0_11 = arith.constant 0 : index
    %11 = vector.load %arg34[%c1_10, %c0_11] : memref<16x32xf32, #tpu.memory_space<vmem>>, vector<1x32xf32>
    tpu.vector_store %arg34[%c1_10, %c0_11], %10 {strides = array<i32>} : memref<16x32xf32, #tpu.memory_space<vmem>>, vector<1x32xf32>,
    %c0_12 = arith.constant 0 : index
    %c2 = arith.constant 2 : index
    %12 = memref.load %arg1[%c0_12, %c2] : memref<2x8xi32, #tpu.memory_space<smem>>
    %13 = arith.index_cast %12 : i32 to index
    %c0_13 = arith.constant 0 : index
    %14 = vector.load %arg2[%13, %c0_13] : memref<100x32xf32, #tpu.memory_space<vmem>>, vector<1x32xf32>
    %c2_14 = arith.constant 2 : index
    %c0_15 = arith.constant 0 : index
    %15 = vector.load %arg3[%c2_14, %c0_15] : memref<64x32xf32, #tpu.memory_space<vmem>>, vector<1x32xf32>
    %16 = arith.addf %14, %15 : vector<1x32xf32>
    %c2_16 = arith.constant 2 : index
    %c0_17 = arith.constant 0 : index
    %17 = vector.load %arg34[%c2_16, %c0_17] : memref<16x32xf32, #tpu.memory_space<vmem>>, vector<1x32xf32>
    tpu.vector_store %arg34[%c2_16, %c0_17], %16 {strides = array<i32>} : memref<16x32xf32, #tpu.memory_space<vmem>>, vector<1x32xf32>,
    %c0_18 = arith.constant 0 : index
    %c3 = arith.constant 3 : index
    %18 = memref.load %arg1[%c0_18, %c3] : memref<2x8xi32, #tpu.memory_space<smem>>
    %19 = arith.index_cast %18 : i32 to index
    %c0_19 = arith.constant 0 : index
    %20 = vector.load %arg2[%19, %c0_19] : memref<100x32xf32, #tpu.memory_space<vmem>>, vector<1x32xf32>
    %c3_20 = arith.constant 3 : index
    %c0_21 = arith.constant 0 : index
    %21 = vector.load %arg3[%c3_20, %c0_21] : memref<64x32xf32, #tpu.memory_space<vmem>>, vector<1x32xf32>
    %22 = arith.addf %20, %21 : vector<1x32xf32>
    %c3_22 = arith.constant 3 : index
    %c0_23 = arith.constant 0 : index
    %23 = vector.load %arg34[%c3_22, %c0_23] : memref<16x32xf32, #tpu.memory_space<vmem>>, vector<1x32xf32>
    tpu.vector_store %arg34[%c3_22, %c0_23], %22 {strides = array<i32>} : memref<16x32xf32, #tpu.memory_space<vmem>>, vector<1x32xf32>,
    %c0_24 = arith.constant 0 : index
    %c4 = arith.constant 4 : index
    %24 = memref.load %arg1[%c0_24, %c4] : memref<2x8xi32, #tpu.memory_space<smem>>
    %25 = arith.index_cast %24 : i32 to index
    %c0_25 = arith.constant 0 : index
    %26 = vector.load %arg2[%25, %c0_25] : memref<100x32xf32, #tpu.memory_space<vmem>>, vector<1x32xf32>
    %c4_26 = arith.constant 4 : index
    %c0_27 = arith.constant 0 : index
    %27 = vector.load %arg3[%c4_26, %c0_27] : memref<64x32xf32, #tpu.memory_space<vmem>>, vector<1x32xf32>
    %28 = arith.addf %26, %27 : vector<1x32xf32>
    %c4_28 = arith.constant 4 : index
    %c0_29 = arith.constant 0 : index
    %29 = vector.load %arg34[%c4_28, %c0_29] : memref<16x32xf32, #tpu.memory_space<vmem>>, vector<1x32xf32>
    tpu.vector_store %arg34[%c4_28, %c0_29], %28 {strides = array<i32>} : memref<16x32xf32, #tpu.memory_space<vmem>>, vector<1x32xf32>,
    %c0_30 = arith.constant 0 : index
    %c5 = arith.constant 5 : index
    %30 = memref.load %arg1[%c0_30, %c5] : memref<2x8xi32, #tpu.memory_space<smem>>
    %31 = arith.index_cast %30 : i32 to index
    %c0_31 = arith.constant 0 : index
    %32 = vector.load %arg2[%31, %c0_31] : memref<100x32xf32, #tpu.memory_space<vmem>>, vector<1x32xf32>
    %c5_32 = arith.constant 5 : index
    %c0_33 = arith.constant 0 : index
    %33 = vector.load %arg3[%c5_32, %c0_33] : memref<64x32xf32, #tpu.memory_space<vmem>>, vector<1x32xf32>
    %34 = arith.addf %32, %33 : vector<1x32xf32>
    %c5_34 = arith.constant 5 : index
    %c0_35 = arith.constant 0 : index
    %35 = vector.load %arg34[%c5_34, %c0_35] : memref<16x32xf32, #tpu.memory_space<vmem>>, vector<1x32xf32>
    tpu.vector_store %arg34[%c5_34, %c0_35], %34 {strides = array<i32>} : memref<16x32xf32, #tpu.memory_space<vmem>>, vector<1x32xf32>,
    %c0_36 = arith.constant 0 : index
    %c6 = arith.constant 6 : index
    %36 = memref.load %arg1[%c0_36, %c6] : memref<2x8xi32, #tpu.memory_space<smem>>
    %37 = arith.index_cast %36 : i32 to index
    %c0_37 = arith.constant 0 : index
    %38 = vector.load %arg2[%37, %c0_37] : memref<100x32xf32, #tpu.memory_space<vmem>>, vector<1x32xf32>
    %c6_38 = arith.constant 6 : index
    %c0_39 = arith.constant 0 : index
    %39 = vector.load %arg3[%c6_38, %c0_39] : memref<64x32xf32, #tpu.memory_space<vmem>>, vector<1x32xf32>
    %40 = arith.addf %38, %39 : vector<1x32xf32>
    %c6_40 = arith.constant 6 : index
    %c0_41 = arith.constant 0 : index
    %41 = vector.load %arg34[%c6_40, %c0_41] : memref<16x32xf32, #tpu.memory_space<vmem>>, vector<1x32xf32>
    tpu.vector_store %arg34[%c6_40, %c0_41], %40 {strides = array<i32>} : memref<16x32xf32, #tpu.memory_space<vmem>>, vector<1x32xf32>,
    %c0_42 = arith.constant 0 : index
    %c7 = arith.constant 7 : index
    %42 = memref.load %arg1[%c0_42, %c7] : memref<2x8xi32, #tpu.memory_space<smem>>
    %43 = arith.index_cast %42 : i32 to index
    %c0_43 = arith.constant 0 : index
    %44 = vector.load %arg2[%43, %c0_43] : memref<100x32xf32, #tpu.memory_space<vmem>>, vector<1x32xf32>
    %c7_44 = arith.constant 7 : index
    %c0_45 = arith.constant 0 : index
    %45 = vector.load %arg3[%c7_44, %c0_45] : memref<64x32xf32, #tpu.memory_space<vmem>>, vector<1x32xf32>
    %46 = arith.addf %44, %45 : vector<1x32xf32>
    %c7_46 = arith.constant 7 : index
    %c0_47 = arith.constant 0 : index
    %47 = vector.load %arg34[%c7_46, %c0_47] : memref<16x32xf32, #tpu.memory_space<vmem>>, vector<1x32xf32>
    tpu.vector_store %arg34[%c7_46, %c0_47], %46 {strides = array<i32>} : memref<16x32xf32, #tpu.memory_space<vmem>>, vector<1x32xf32>,
    %c1_48 = arith.constant 1 : index
    %c0_49 = arith.constant 0 : index
    %48 = memref.load %arg1[%c1_48, %c0_49] : memref<2x8xi32, #tpu.memory_space<smem>>
    %49 = arith.index_cast %48 : i32 to index
    %c0_50 = arith.constant 0 : index
    %50 = vector.load %arg2[%49, %c0_50] : memref<100x32xf32, #tpu.memory_space<vmem>>, vector<1x32xf32>
    %c0_51 = arith.constant 0 : index
    %c0_52 = arith.constant 0 : index
    %51 = vector.load %arg3[%c0_51, %c0_52] : memref<64x32xf32, #tpu.memory_space<vmem>>, vector<1x32xf32>
    %52 = arith.addf %50, %51 : vector<1x32xf32>
    %c8 = arith.constant 8 : index
    %c0_53 = arith.constant 0 : index
    %53 = vector.load %arg34[%c8, %c0_53] : memref<16x32xf32, #tpu.memory_space<vmem>>, vector<1x32xf32>
    tpu.vector_store %arg34[%c8, %c0_53], %52 {strides = array<i32>} : memref<16x32xf32, #tpu.memory_space<vmem>>, vector<1x32xf32>,
    %c1_54 = arith.constant 1 : index
    %c1_55 = arith.constant 1 : index
    %54 = memref.load %arg1[%c1_54, %c1_55] : memref<2x8xi32, #tpu.memory_space<smem>>
    %55 = arith.index_cast %54 : i32 to index
    %c0_56 = arith.constant 0 : index
    %56 = vector.load %arg2[%55, %c0_56] : memref<100x32xf32, #tpu.memory_space<vmem>>, vector<1x32xf32>
    %c1_57 = arith.constant 1 : index
    %c0_58 = arith.constant 0 : index
    %57 = vector.load %arg3[%c1_57, %c0_58] : memref<64x32xf32, #tpu.memory_space<vmem>>, vector<1x32xf32>
    %58 = arith.addf %56, %57 : vector<1x32xf32>
    %c9 = arith.constant 9 : index
    %c0_59 = arith.constant 0 : index
    %59 = vector.load %arg34[%c9, %c0_59] : memref<16x32xf32, #tpu.memory_space<vmem>>, vector<1x32xf32>
    tpu.vector_store %arg34[%c9, %c0_59], %58 {strides = array<i32>} : memref<16x32xf32, #tpu.memory_space<vmem>>, vector<1x32xf32>,
    %c1_60 = arith.constant 1 : index
    %c2_61 = arith.constant 2 : index
    %60 = memref.load %arg1[%c1_60, %c2_61] : memref<2x8xi32, #tpu.memory_space<smem>>
    %61 = arith.index_cast %60 : i32 to index
    %c0_62 = arith.constant 0 : index
    %62 = vector.load %arg2[%61, %c0_62] : memref<100x32xf32, #tpu.memory_space<vmem>>, vector<1x32xf32>
    %c2_63 = arith.constant 2 : index
    %c0_64 = arith.constant 0 : index
    %63 = vector.load %arg3[%c2_63, %c0_64] : memref<64x32xf32, #tpu.memory_space<vmem>>, vector<1x32xf32>
    %64 = arith.addf %62, %63 : vector<1x32xf32>
    %c10 = arith.constant 10 : index
    %c0_65 = arith.constant 0 : index
    %65 = vector.load %arg34[%c10, %c0_65] : memref<16x32xf32, #tpu.memory_space<vmem>>, vector<1x32xf32>
    tpu.vector_store %arg34[%c10, %c0_65], %64 {strides = array<i32>} : memref<16x32xf32, #tpu.memory_space<vmem>>, vector<1x32xf32>,
    %c1_66 = arith.constant 1 : index
    %c3_67 = arith.constant 3 : index
    %66 = memref.load %arg1[%c1_66, %c3_67] : memref<2x8xi32, #tpu.memory_space<smem>>
    %67 = arith.index_cast %66 : i32 to index
    %c0_68 = arith.constant 0 : index
    %68 = vector.load %arg2[%67, %c0_68] : memref<100x32xf32, #tpu.memory_space<vmem>>, vector<1x32xf32>
    %c3_69 = arith.constant 3 : index
    %c0_70 = arith.constant 0 : index
    %69 = vector.load %arg3[%c3_69, %c0_70] : memref<64x32xf32, #tpu.memory_space<vmem>>, vector<1x32xf32>
    %70 = arith.addf %68, %69 : vector<1x32xf32>
    %c11 = arith.constant 11 : index
    %c0_71 = arith.constant 0 : index
    %71 = vector.load %arg34[%c11, %c0_71] : memref<16x32xf32, #tpu.memory_space<vmem>>, vector<1x32xf32>
    tpu.vector_store %arg34[%c11, %c0_71], %70 {strides = array<i32>} : memref<16x32xf32, #tpu.memory_space<vmem>>, vector<1x32xf32>,
    %c1_72 = arith.constant 1 : index
    %c4_73 = arith.constant 4 : index
    %72 = memref.load %arg1[%c1_72, %c4_73] : memref<2x8xi32, #tpu.memory_space<smem>>
    %73 = arith.index_cast %72 : i32 to index
    %c0_74 = arith.constant 0 : index
    %74 = vector.load %arg2[%73, %c0_74] : memref<100x32xf32, #tpu.memory_space<vmem>>, vector<1x32xf32>
    %c4_75 = arith.constant 4 : index
    %c0_76 = arith.constant 0 : index
    %75 = vector.load %arg3[%c4_75, %c0_76] : memref<64x32xf32, #tpu.memory_space<vmem>>, vector<1x32xf32>
    %76 = arith.addf %74, %75 : vector<1x32xf32>
    %c12 = arith.constant 12 : index
    %c0_77 = arith.constant 0 : index
    %77 = vector.load %arg34[%c12, %c0_77] : memref<16x32xf32, #tpu.memory_space<vmem>>, vector<1x32xf32>
    tpu.vector_store %arg34[%c12, %c0_77], %76 {strides = array<i32>} : memref<16x32xf32, #tpu.memory_space<vmem>>, vector<1x32xf32>,
    %c1_78 = arith.constant 1 : index
    %c5_79 = arith.constant 5 : index
    %78 = memref.load %arg1[%c1_78, %c5_79] : memref<2x8xi32, #tpu.memory_space<smem>>
    %79 = arith.index_cast %78 : i32 to index
    %c0_80 = arith.constant 0 : index
    %80 = vector.load %arg2[%79, %c0_80] : memref<100x32xf32, #tpu.memory_space<vmem>>, vector<1x32xf32>
    %c5_81 = arith.constant 5 : index
    %c0_82 = arith.constant 0 : index
    %81 = vector.load %arg3[%c5_81, %c0_82] : memref<64x32xf32, #tpu.memory_space<vmem>>, vector<1x32xf32>
    %82 = arith.addf %80, %81 : vector<1x32xf32>
    %c13 = arith.constant 13 : index
    %c0_83 = arith.constant 0 : index
    %83 = vector.load %arg34[%c13, %c0_83] : memref<16x32xf32, #tpu.memory_space<vmem>>, vector<1x32xf32>
    tpu.vector_store %arg34[%c13, %c0_83], %82 {strides = array<i32>} : memref<16x32xf32, #tpu.memory_space<vmem>>, vector<1x32xf32>,
    %c1_84 = arith.constant 1 : index
    %c6_85 = arith.constant 6 : index
    %84 = memref.load %arg1[%c1_84, %c6_85] : memref<2x8xi32, #tpu.memory_space<smem>>
    %85 = arith.index_cast %84 : i32 to index
    %c0_86 = arith.constant 0 : index
    %86 = vector.load %arg2[%85, %c0_86] : memref<100x32xf32, #tpu.memory_space<vmem>>, vector<1x32xf32>
    %c6_87 = arith.constant 6 : index
    %c0_88 = arith.constant 0 : index
    %87 = vector.load %arg3[%c6_87, %c0_88] : memref<64x32xf32, #tpu.memory_space<vmem>>, vector<1x32xf32>
    %88 = arith.addf %86, %87 : vector<1x32xf32>
    %c14 = arith.constant 14 : index
    %c0_89 = arith.constant 0 : index
    %89 = vector.load %arg34[%c14, %c0_89] : memref<16x32xf32, #tpu.memory_space<vmem>>, vector<1x32xf32>
    tpu.vector_store %arg34[%c14, %c0_89], %88 {strides = array<i32>} : memref<16x32xf32, #tpu.memory_space<vmem>>, vector<1x32xf32>,
    %c1_90 = arith.constant 1 : index
    %c7_91 = arith.constant 7 : index
    %90 = memref.load %arg1[%c1_90, %c7_91] : memref<2x8xi32, #tpu.memory_space<smem>>
    %91 = arith.index_cast %90 : i32 to index
    %c0_92 = arith.constant 0 : index
    %92 = vector.load %arg2[%91, %c0_92] : memref<100x32xf32, #tpu.memory_space<vmem>>, vector<1x32xf32>
    %c7_93 = arith.constant 7 : index
    %c0_94 = arith.constant 0 : index
    %93 = vector.load %arg3[%c7_93, %c0_94] : memref<64x32xf32, #tpu.memory_space<vmem>>, vector<1x32xf32>
    %94 = arith.addf %92, %93 : vector<1x32xf32>
    %c15 = arith.constant 15 : index
    %c0_95 = arith.constant 0 : index
    %95 = vector.load %arg34[%c15, %c0_95] : memref<16x32xf32, #tpu.memory_space<vmem>>, vector<1x32xf32>
    tpu.vector_store %arg34[%c15, %c0_95], %94 {strides = array<i32>} : memref<16x32xf32, #tpu.memory_space<vmem>>, vector<1x32xf32>,
    %c0_96 = arith.constant 0 : index
    %c0_97 = arith.constant 0 : index
    %96 = vector.load %arg34[%c0_96, %c0_97] : memref<16x32xf32, #tpu.memory_space<vmem>>, vector<16x32xf32>
    %c0_98 = arith.constant 0 : index
    %c0_99 = arith.constant 0 : index
    %97 = vector.load %arg4[%c0_98, %c0_99] : memref<1x32xf32, #tpu.memory_space<vmem>>, vector<1x32xf32>
    %c0_100 = arith.constant 0 : index
    %c0_101 = arith.constant 0 : index
    %98 = vector.load %arg5[%c0_100, %c0_101] : memref<1x32xf32, #tpu.memory_space<vmem>>, vector<1x32xf32>
    %cst = arith.constant dense<0.000000e+00> : vector<16xf32>
    %99 = vector.multi_reduction <add>, %96, %cst [1] : vector<16x32xf32> to vector<16xf32>
    %100 = vector.shape_cast %99 : vector<16xf32> to vector<16x1xf32>
    %cst_102 = arith.constant 3.200000e+01 : f32
    %101 = vector.broadcast %cst_102 : f32 to vector<16x1xf32>
    %102 = arith.divf %100, %101 : vector<16x1xf32>
    %103 = vector.broadcast %102 : vector<16x1xf32> to vector<16x32xf32>
    %104 = arith.subf %96, %103 : vector<16x32xf32>
    %105 = arith.mulf %104, %104 : vector<16x32xf32>
    %cst_103 = arith.constant dense<0.000000e+00> : vector<16xf32>
    %106 = vector.multi_reduction <add>, %105, %cst_103 [1] : vector<16x32xf32> to vector<16xf32>
    %107 = vector.shape_cast %106 : vector<16xf32> to vector<16x1xf32>
    %cst_104 = arith.constant 3.200000e+01 : f32
    %108 = vector.broadcast %cst_104 : f32 to vector<16x1xf32>
    %109 = arith.divf %107, %108 : vector<16x1xf32>
    %cst_105 = arith.constant 9.99999996E-13 : f32
    %110 = vector.broadcast %cst_105 : f32 to vector<16x1xf32>
    %111 = arith.addf %109, %110 : vector<16x1xf32>
    %112 = math.rsqrt %111 : vector<16x1xf32>
    %113 = vector.broadcast %112 : vector<16x1xf32> to vector<16x32xf32>
    %114 = arith.mulf %104, %113 : vector<16x32xf32>
    %115 = vector.broadcast %97 : vector<1x32xf32> to vector<16x32xf32>
    %116 = arith.mulf %114, %115 : vector<16x32xf32>
    %117 = vector.broadcast %98 : vector<1x32xf32> to vector<16x32xf32>
    %118 = arith.addf %116, %117 : vector<16x32xf32>
    %c0_106 = arith.constant 0 : index
    %c0_107 = arith.constant 0 : index
    %119 = vector.load %arg6[%c0_106, %c0_107] : memref<16x16xf32, #tpu.memory_space<vmem>>, vector<16x16xf32>
    %120 = arith.truncf %118 : vector<16x32xf32> to vector<16x32xbf16>
    %c0_108 = arith.constant 0 : index
    %c0_109 = arith.constant 0 : index
    %121 = vector.load %arg7[%c0_108, %c0_109] : memref<32x96xbf16, #tpu.memory_space<vmem>>, vector<32x96xbf16>
    %cst_110 = arith.constant dense<0.000000e+00> : vector<16x96xf32>
    %122 = tpu.matmul %120, %121, %cst_110 {dimension_numbers = #tpu.dot_dimension_numbers<[1], [0], [0], [1], [0, 0, 1, 1], [], []>} : vector<16x32xbf16>, vector<32x96xbf16>, vector<16x96xf32> -> vector<16x96xf32>
    %c0_111 = arith.constant 0 : index
    %c0_112 = arith.constant 0 : index
    %123 = vector.load %arg8[%c0_111, %c0_112] : memref<1x96xf32, #tpu.memory_space<vmem>>, vector<1x96xf32>
    %124 = vector.broadcast %123 : vector<1x96xf32> to vector<16x96xf32>
    %125 = arith.addf %122, %124 : vector<16x96xf32>
    %126 = vector.extract_strided_slice %125 {offsets = [0, 0], sizes = [16, 16], strides = [1, 1]} : vector<16x96xf32> to vector<16x16xf32>
    %127 = vector.extract_strided_slice %125 {offsets = [0, 32], sizes = [16, 16], strides = [1, 1]} : vector<16x96xf32> to vector<16x16xf32>
    %128 = vector.extract_strided_slice %125 {offsets = [0, 64], sizes = [16, 16], strides = [1, 1]} : vector<16x96xf32> to vector<16x16xf32>
    %cst_113 = arith.constant dense<0.000000e+00> : vector<16x16xf32>
    %129 = tpu.matmul %126, %127, %cst_113 {dimension_numbers = #tpu.dot_dimension_numbers<[1], [1], [0], [0], [0, 0, 1, 0], [], []>} : vector<16x16xf32>, vector<16x16xf32>, vector<16x16xf32> -> vector<16x16xf32>
    %130 = arith.addf %129, %119 : vector<16x16xf32>
    %cst_114 = arith.constant dense<0xFF800000> : vector<16xf32>
    %131 = vector.multi_reduction <maximumf>, %130, %cst_114 [1] : vector<16x16xf32> to vector<16xf32>
    %132 = vector.shape_cast %131 : vector<16xf32> to vector<16x1xf32>
    %133 = vector.broadcast %132 : vector<16x1xf32> to vector<16x16xf32>
    %134 = arith.subf %130, %133 : vector<16x16xf32>
    %135 = math.exp %134 : vector<16x16xf32>
    %cst_115 = arith.constant dense<0.000000e+00> : vector<16xf32>
    %136 = vector.multi_reduction <add>, %135, %cst_115 [1] : vector<16x16xf32> to vector<16xf32>
    %137 = vector.shape_cast %136 : vector<16xf32> to vector<16x1xf32>
    %138 = tpu.reciprocal %137 {approx = true} : vector<16x1xf32> -> vector<16x1xf32>
    %139 = vector.broadcast %138 : vector<16x1xf32> to vector<16x16xf32>
    %140 = arith.mulf %135, %139 : vector<16x16xf32>
    %cst_116 = arith.constant dense<0.000000e+00> : vector<16x16xf32>
    %141 = tpu.matmul %140, %128, %cst_116 {dimension_numbers = #tpu.dot_dimension_numbers<[1], [0], [0], [1], [0, 0, 1, 1], [], []>} : vector<16x16xf32>, vector<16x16xf32>, vector<16x16xf32> -> vector<16x16xf32>
    %142 = vector.extract_strided_slice %125 {offsets = [0, 16], sizes = [16, 16], strides = [1, 1]} : vector<16x96xf32> to vector<16x16xf32>
    %143 = vector.extract_strided_slice %125 {offsets = [0, 48], sizes = [16, 16], strides = [1, 1]} : vector<16x96xf32> to vector<16x16xf32>
    %144 = vector.extract_strided_slice %125 {offsets = [0, 80], sizes = [16, 16], strides = [1, 1]} : vector<16x96xf32> to vector<16x16xf32>
    %cst_117 = arith.constant dense<0.000000e+00> : vector<16x16xf32>
    %145 = tpu.matmul %142, %143, %cst_117 {dimension_numbers = #tpu.dot_dimension_numbers<[1], [1], [0], [0], [0, 0, 1, 0], [], []>} : vector<16x16xf32>, vector<16x16xf32>, vector<16x16xf32> -> vector<16x16xf32>
    %146 = arith.addf %145, %119 : vector<16x16xf32>
    %cst_118 = arith.constant dense<0xFF800000> : vector<16xf32>
    %147 = vector.multi_reduction <maximumf>, %146, %cst_118 [1] : vector<16x16xf32> to vector<16xf32>
    %148 = vector.shape_cast %147 : vector<16xf32> to vector<16x1xf32>
    %149 = vector.broadcast %148 : vector<16x1xf32> to vector<16x16xf32>
    %150 = arith.subf %146, %149 : vector<16x16xf32>
    %151 = math.exp %150 : vector<16x16xf32>
    %cst_119 = arith.constant dense<0.000000e+00> : vector<16xf32>
    %152 = vector.multi_reduction <add>, %151, %cst_119 [1] : vector<16x16xf32> to vector<16xf32>
    %153 = vector.shape_cast %152 : vector<16xf32> to vector<16x1xf32>
    %154 = tpu.reciprocal %153 {approx = true} : vector<16x1xf32> -> vector<16x1xf32>
    %155 = vector.broadcast %154 : vector<16x1xf32> to vector<16x16xf32>
    %156 = arith.mulf %151, %155 : vector<16x16xf32>
    %cst_120 = arith.constant dense<0.000000e+00> : vector<16x16xf32>
    %157 = tpu.matmul %156, %144, %cst_120 {dimension_numbers = #tpu.dot_dimension_numbers<[1], [0], [0], [1], [0, 0, 1, 1], [], []>} : vector<16x16xf32>, vector<16x16xf32>, vector<16x16xf32> -> vector<16x16xf32>
    %158 = tpu.concatenate %141, %157 in 1 : vector<16x16xf32>, vector<16x16xf32> -> vector<16x32xf32>
    %159 = arith.truncf %158 : vector<16x32xf32> to vector<16x32xbf16>
    %c0_121 = arith.constant 0 : index
    %c0_122 = arith.constant 0 : index
    %160 = vector.load %arg9[%c0_121, %c0_122] : memref<32x32xbf16, #tpu.memory_space<vmem>>, vector<32x32xbf16>
    %cst_123 = arith.constant dense<0.000000e+00> : vector<16x32xf32>
    %161 = tpu.matmul %159, %160, %cst_123 {dimension_numbers = #tpu.dot_dimension_numbers<[1], [0], [0], [1], [0, 0, 1, 1], [], []>} : vector<16x32xbf16>, vector<32x32xbf16>, vector<16x32xf32> -> vector<16x32xf32>
    %c0_124 = arith.constant 0 : index
    %c0_125 = arith.constant 0 : index
    %162 = vector.load %arg10[%c0_124, %c0_125] : memref<1x32xf32, #tpu.memory_space<vmem>>, vector<1x32xf32>
    %163 = vector.broadcast %162 : vector<1x32xf32> to vector<16x32xf32>
    %164 = arith.addf %161, %163 : vector<16x32xf32>
    %165 = arith.addf %118, %164 : vector<16x32xf32>
    %c0_126 = arith.constant 0 : index
    %c0_127 = arith.constant 0 : index
    %166 = vector.load %arg11[%c0_126, %c0_127] : memref<1x32xf32, #tpu.memory_space<vmem>>, vector<1x32xf32>
    %c0_128 = arith.constant 0 : index
    %c0_129 = arith.constant 0 : index
    %167 = vector.load %arg12[%c0_128, %c0_129] : memref<1x32xf32, #tpu.memory_space<vmem>>, vector<1x32xf32>
    %cst_130 = arith.constant dense<0.000000e+00> : vector<16xf32>
    %168 = vector.multi_reduction <add>, %165, %cst_130 [1] : vector<16x32xf32> to vector<16xf32>
    %169 = vector.shape_cast %168 : vector<16xf32> to vector<16x1xf32>
    %cst_131 = arith.constant 3.200000e+01 : f32
    %170 = vector.broadcast %cst_131 : f32 to vector<16x1xf32>
    %171 = arith.divf %169, %170 : vector<16x1xf32>
    %172 = vector.broadcast %171 : vector<16x1xf32> to vector<16x32xf32>
    %173 = arith.subf %165, %172 : vector<16x32xf32>
    %174 = arith.mulf %173, %173 : vector<16x32xf32>
    %cst_132 = arith.constant dense<0.000000e+00> : vector<16xf32>
    %175 = vector.multi_reduction <add>, %174, %cst_132 [1] : vector<16x32xf32> to vector<16xf32>
    %176 = vector.shape_cast %175 : vector<16xf32> to vector<16x1xf32>
    %cst_133 = arith.constant 3.200000e+01 : f32
    %177 = vector.broadcast %cst_133 : f32 to vector<16x1xf32>
    %178 = arith.divf %176, %177 : vector<16x1xf32>
    %cst_134 = arith.constant 9.99999996E-13 : f32
    %179 = vector.broadcast %cst_134 : f32 to vector<16x1xf32>
    %180 = arith.addf %178, %179 : vector<16x1xf32>
    %181 = math.rsqrt %180 : vector<16x1xf32>
    %182 = vector.broadcast %181 : vector<16x1xf32> to vector<16x32xf32>
    %183 = arith.mulf %173, %182 : vector<16x32xf32>
    %184 = vector.broadcast %166 : vector<1x32xf32> to vector<16x32xf32>
    %185 = arith.mulf %183, %184 : vector<16x32xf32>
    %186 = vector.broadcast %167 : vector<1x32xf32> to vector<16x32xf32>
    %187 = arith.addf %185, %186 : vector<16x32xf32>
    %188 = arith.truncf %187 : vector<16x32xf32> to vector<16x32xbf16>
    %c0_135 = arith.constant 0 : index
    %c0_136 = arith.constant 0 : index
    %189 = vector.load %arg13[%c0_135, %c0_136] : memref<32x64xbf16, #tpu.memory_space<vmem>>, vector<32x64xbf16>
    %cst_137 = arith.constant dense<0.000000e+00> : vector<16x64xf32>
    %190 = tpu.matmul %188, %189, %cst_137 {dimension_numbers = #tpu.dot_dimension_numbers<[1], [0], [0], [1], [0, 0, 1, 1], [], []>} : vector<16x32xbf16>, vector<32x64xbf16>, vector<16x64xf32> -> vector<16x64xf32>
    %c0_138 = arith.constant 0 : index
    %c0_139 = arith.constant 0 : index
    %191 = vector.load %arg14[%c0_138, %c0_139] : memref<1x64xf32, #tpu.memory_space<vmem>>, vector<1x64xf32>
    %192 = vector.broadcast %191 : vector<1x64xf32> to vector<16x64xf32>
    %193 = arith.addf %190, %192 : vector<16x64xf32>
    %cst_140 = arith.constant 5.000000e-01 : f32
    %194 = vector.broadcast %cst_140 : f32 to vector<16x64xf32>
    %195 = arith.mulf %194, %193 : vector<16x64xf32>
    %cst_141 = arith.constant 0.707106769 : f32
    %196 = vector.broadcast %cst_141 : f32 to vector<16x64xf32>
    %197 = arith.mulf %193, %196 : vector<16x64xf32>
    %cst_142 = arith.constant 0.000000e+00 : f32
    %198 = vector.broadcast %cst_142 : f32 to vector<16x64xf32>
    %199 = arith.cmpf olt, %197, %198 : vector<16x64xf32>
    %cst_143 = arith.constant -1.000000e+00 : f32
    %cst_144 = arith.constant 1.000000e+00 : f32
    %200 = vector.broadcast %cst_143 : f32 to vector<16x64xf32>
    %201 = vector.broadcast %cst_144 : f32 to vector<16x64xf32>
    %202 = arith.select %199, %200, %201 : vector<16x64xi1>, vector<16x64xf32>
    %203 = math.absf %197 : vector<16x64xf32>
    %cst_145 = arith.constant 0.327591091 : f32
    %204 = vector.broadcast %cst_145 : f32 to vector<16x64xf32>
    %205 = arith.mulf %204, %203 : vector<16x64xf32>
    %cst_146 = arith.constant 1.000000e+00 : f32
    %206 = vector.broadcast %cst_146 : f32 to vector<16x64xf32>
    %207 = arith.addf %206, %205 : vector<16x64xf32>
    %208 = tpu.reciprocal %207 {approx = true} : vector<16x64xf32> -> vector<16x64xf32>
    %cst_147 = arith.constant 1.06140542 : f32
    %209 = vector.broadcast %cst_147 : f32 to vector<16x64xf32>
    %210 = arith.mulf %209, %208 : vector<16x64xf32>
    %cst_148 = arith.constant -1.45315206 : f32
    %211 = vector.broadcast %cst_148 : f32 to vector<16x64xf32>
    %212 = arith.addf %210, %211 : vector<16x64xf32>
    %213 = arith.mulf %212, %208 : vector<16x64xf32>
    %cst_149 = arith.constant 1.42141378 : f32
    %214 = vector.broadcast %cst_149 : f32 to vector<16x64xf32>
    %215 = arith.addf %213, %214 : vector<16x64xf32>
    %216 = arith.mulf %215, %208 : vector<16x64xf32>
    %cst_150 = arith.constant -0.284496725 : f32
    %217 = vector.broadcast %cst_150 : f32 to vector<16x64xf32>
    %218 = arith.addf %216, %217 : vector<16x64xf32>
    %219 = arith.mulf %218, %208 : vector<16x64xf32>
    %cst_151 = arith.constant 0.254829586 : f32
    %220 = vector.broadcast %cst_151 : f32 to vector<16x64xf32>
    %221 = arith.addf %219, %220 : vector<16x64xf32>
    %222 = arith.mulf %221, %208 : vector<16x64xf32>
    %cst_152 = arith.constant 0.000000e+00 : f32
    %223 = vector.broadcast %cst_152 : f32 to vector<16x64xf32>
    %224 = arith.subf %223, %203 : vector<16x64xf32>
    %225 = arith.mulf %224, %203 : vector<16x64xf32>
    %226 = math.exp %225 : vector<16x64xf32>
    %227 = arith.mulf %222, %226 : vector<16x64xf32>
    %cst_153 = arith.constant 1.000000e+00 : f32
    %228 = vector.broadcast %cst_153 : f32 to vector<16x64xf32>
    %229 = arith.subf %228, %227 : vector<16x64xf32>
    %230 = arith.mulf %202, %229 : vector<16x64xf32>
    %cst_154 = arith.constant 1.000000e+00 : f32
    %231 = vector.broadcast %cst_154 : f32 to vector<16x64xf32>
    %232 = arith.addf %231, %230 : vector<16x64xf32>
    %233 = arith.mulf %195, %232 : vector<16x64xf32>
    %234 = arith.truncf %233 : vector<16x64xf32> to vector<16x64xbf16>
    %c0_155 = arith.constant 0 : index
    %c0_156 = arith.constant 0 : index
    %235 = vector.load %arg15[%c0_155, %c0_156] : memref<64x32xbf16, #tpu.memory_space<vmem>>, vector<64x32xbf16>
    %cst_157 = arith.constant dense<0.000000e+00> : vector<16x32xf32>
    %236 = tpu.matmul %234, %235, %cst_157 {dimension_numbers = #tpu.dot_dimension_numbers<[1], [0], [0], [1], [0, 0, 1, 1], [], []>} : vector<16x64xbf16>, vector<64x32xbf16>, vector<16x32xf32> -> vector<16x32xf32>
    %c0_158 = arith.constant 0 : index
    %c0_159 = arith.constant 0 : index
    %237 = vector.load %arg16[%c0_158, %c0_159] : memref<1x32xf32, #tpu.memory_space<vmem>>, vector<1x32xf32>
    %238 = vector.broadcast %237 : vector<1x32xf32> to vector<16x32xf32>
    %239 = arith.addf %236, %238 : vector<16x32xf32>
    %240 = arith.addf %187, %239 : vector<16x32xf32>
    %c0_160 = arith.constant 0 : index
    %c0_161 = arith.constant 0 : index
    %241 = vector.load %arg17[%c0_160, %c0_161] : memref<1x32xf32, #tpu.memory_space<vmem>>, vector<1x32xf32>
    %c0_162 = arith.constant 0 : index
    %c0_163 = arith.constant 0 : index
    %242 = vector.load %arg18[%c0_162, %c0_163] : memref<1x32xf32, #tpu.memory_space<vmem>>, vector<1x32xf32>
    %cst_164 = arith.constant dense<0.000000e+00> : vector<16xf32>
    %243 = vector.multi_reduction <add>, %240, %cst_164 [1] : vector<16x32xf32> to vector<16xf32>
    %244 = vector.shape_cast %243 : vector<16xf32> to vector<16x1xf32>
    %cst_165 = arith.constant 3.200000e+01 : f32
    %245 = vector.broadcast %cst_165 : f32 to vector<16x1xf32>
    %246 = arith.divf %244, %245 : vector<16x1xf32>
    %247 = vector.broadcast %246 : vector<16x1xf32> to vector<16x32xf32>
    %248 = arith.subf %240, %247 : vector<16x32xf32>
    %249 = arith.mulf %248, %248 : vector<16x32xf32>
    %cst_166 = arith.constant dense<0.000000e+00> : vector<16xf32>
    %250 = vector.multi_reduction <add>, %249, %cst_166 [1] : vector<16x32xf32> to vector<16xf32>
    %251 = vector.shape_cast %250 : vector<16xf32> to vector<16x1xf32>
    %cst_167 = arith.constant 3.200000e+01 : f32
    %252 = vector.broadcast %cst_167 : f32 to vector<16x1xf32>
    %253 = arith.divf %251, %252 : vector<16x1xf32>
    %cst_168 = arith.constant 9.99999996E-13 : f32
    %254 = vector.broadcast %cst_168 : f32 to vector<16x1xf32>
    %255 = arith.addf %253, %254 : vector<16x1xf32>
    %256 = math.rsqrt %255 : vector<16x1xf32>
    %257 = vector.broadcast %256 : vector<16x1xf32> to vector<16x32xf32>
    %258 = arith.mulf %248, %257 : vector<16x32xf32>
    %259 = vector.broadcast %241 : vector<1x32xf32> to vector<16x32xf32>
    %260 = arith.mulf %258, %259 : vector<16x32xf32>
    %261 = vector.broadcast %242 : vector<1x32xf32> to vector<16x32xf32>
    %262 = arith.addf %260, %261 : vector<16x32xf32>
    %263 = arith.truncf %262 : vector<16x32xf32> to vector<16x32xbf16>
    %c0_169 = arith.constant 0 : index
    %c0_170 = arith.constant 0 : index
    %264 = vector.load %arg19[%c0_169, %c0_170] : memref<32x96xbf16, #tpu.memory_space<vmem>>, vector<32x96xbf16>
    %cst_171 = arith.constant dense<0.000000e+00> : vector<16x96xf32>
    %265 = tpu.matmul %263, %264, %cst_171 {dimension_numbers = #tpu.dot_dimension_numbers<[1], [0], [0], [1], [0, 0, 1, 1], [], []>} : vector<16x32xbf16>, vector<32x96xbf16>, vector<16x96xf32> -> vector<16x96xf32>
    %c0_172 = arith.constant 0 : index
    %c0_173 = arith.constant 0 : index
    %266 = vector.load %arg20[%c0_172, %c0_173] : memref<1x96xf32, #tpu.memory_space<vmem>>, vector<1x96xf32>
    %267 = vector.broadcast %266 : vector<1x96xf32> to vector<16x96xf32>
    %268 = arith.addf %265, %267 : vector<16x96xf32>
    %269 = vector.extract_strided_slice %268 {offsets = [0, 0], sizes = [16, 16], strides = [1, 1]} : vector<16x96xf32> to vector<16x16xf32>
    %270 = vector.extract_strided_slice %268 {offsets = [0, 32], sizes = [16, 16], strides = [1, 1]} : vector<16x96xf32> to vector<16x16xf32>
    %271 = vector.extract_strided_slice %268 {offsets = [0, 64], sizes = [16, 16], strides = [1, 1]} : vector<16x96xf32> to vector<16x16xf32>
    %cst_174 = arith.constant dense<0.000000e+00> : vector<16x16xf32>
    %272 = tpu.matmul %269, %270, %cst_174 {dimension_numbers = #tpu.dot_dimension_numbers<[1], [1], [0], [0], [0, 0, 1, 0], [], []>} : vector<16x16xf32>, vector<16x16xf32>, vector<16x16xf32> -> vector<16x16xf32>
    %273 = arith.addf %272, %119 : vector<16x16xf32>
    %cst_175 = arith.constant dense<0xFF800000> : vector<16xf32>
    %274 = vector.multi_reduction <maximumf>, %273, %cst_175 [1] : vector<16x16xf32> to vector<16xf32>
    %275 = vector.shape_cast %274 : vector<16xf32> to vector<16x1xf32>
    %276 = vector.broadcast %275 : vector<16x1xf32> to vector<16x16xf32>
    %277 = arith.subf %273, %276 : vector<16x16xf32>
    %278 = math.exp %277 : vector<16x16xf32>
    %cst_176 = arith.constant dense<0.000000e+00> : vector<16xf32>
    %279 = vector.multi_reduction <add>, %278, %cst_176 [1] : vector<16x16xf32> to vector<16xf32>
    %280 = vector.shape_cast %279 : vector<16xf32> to vector<16x1xf32>
    %281 = tpu.reciprocal %280 {approx = true} : vector<16x1xf32> -> vector<16x1xf32>
    %282 = vector.broadcast %281 : vector<16x1xf32> to vector<16x16xf32>
    %283 = arith.mulf %278, %282 : vector<16x16xf32>
    %cst_177 = arith.constant dense<0.000000e+00> : vector<16x16xf32>
    %284 = tpu.matmul %283, %271, %cst_177 {dimension_numbers = #tpu.dot_dimension_numbers<[1], [0], [0], [1], [0, 0, 1, 1], [], []>} : vector<16x16xf32>, vector<16x16xf32>, vector<16x16xf32> -> vector<16x16xf32>
    %285 = vector.extract_strided_slice %268 {offsets = [0, 16], sizes = [16, 16], strides = [1, 1]} : vector<16x96xf32> to vector<16x16xf32>
    %286 = vector.extract_strided_slice %268 {offsets = [0, 48], sizes = [16, 16], strides = [1, 1]} : vector<16x96xf32> to vector<16x16xf32>
    %287 = vector.extract_strided_slice %268 {offsets = [0, 80], sizes = [16, 16], strides = [1, 1]} : vector<16x96xf32> to vector<16x16xf32>
    %cst_178 = arith.constant dense<0.000000e+00> : vector<16x16xf32>
    %288 = tpu.matmul %285, %286, %cst_178 {dimension_numbers = #tpu.dot_dimension_numbers<[1], [1], [0], [0], [0, 0, 1, 0], [], []>} : vector<16x16xf32>, vector<16x16xf32>, vector<16x16xf32> -> vector<16x16xf32>
    %289 = arith.addf %288, %119 : vector<16x16xf32>
    %cst_179 = arith.constant dense<0xFF800000> : vector<16xf32>
    %290 = vector.multi_reduction <maximumf>, %289, %cst_179 [1] : vector<16x16xf32> to vector<16xf32>
    %291 = vector.shape_cast %290 : vector<16xf32> to vector<16x1xf32>
    %292 = vector.broadcast %291 : vector<16x1xf32> to vector<16x16xf32>
    %293 = arith.subf %289, %292 : vector<16x16xf32>
    %294 = math.exp %293 : vector<16x16xf32>
    %cst_180 = arith.constant dense<0.000000e+00> : vector<16xf32>
    %295 = vector.multi_reduction <add>, %294, %cst_180 [1] : vector<16x16xf32> to vector<16xf32>
    %296 = vector.shape_cast %295 : vector<16xf32> to vector<16x1xf32>
    %297 = tpu.reciprocal %296 {approx = true} : vector<16x1xf32> -> vector<16x1xf32>
    %298 = vector.broadcast %297 : vector<16x1xf32> to vector<16x16xf32>
    %299 = arith.mulf %294, %298 : vector<16x16xf32>
    %cst_181 = arith.constant dense<0.000000e+00> : vector<16x16xf32>
    %300 = tpu.matmul %299, %287, %cst_181 {dimension_numbers = #tpu.dot_dimension_numbers<[1], [0], [0], [1], [0, 0, 1, 1], [], []>} : vector<16x16xf32>, vector<16x16xf32>, vector<16x16xf32> -> vector<16x16xf32>
    %301 = tpu.concatenate %284, %300 in 1 : vector<16x16xf32>, vector<16x16xf32> -> vector<16x32xf32>
    %302 = arith.truncf %301 : vector<16x32xf32> to vector<16x32xbf16>
    %c0_182 = arith.constant 0 : index
    %c0_183 = arith.constant 0 : index
    %303 = vector.load %arg21[%c0_182, %c0_183] : memref<32x32xbf16, #tpu.memory_space<vmem>>, vector<32x32xbf16>
    %cst_184 = arith.constant dense<0.000000e+00> : vector<16x32xf32>
    %304 = tpu.matmul %302, %303, %cst_184 {dimension_numbers = #tpu.dot_dimension_numbers<[1], [0], [0], [1], [0, 0, 1, 1], [], []>} : vector<16x32xbf16>, vector<32x32xbf16>, vector<16x32xf32> -> vector<16x32xf32>
    %c0_185 = arith.constant 0 : index
    %c0_186 = arith.constant 0 : index
    %305 = vector.load %arg22[%c0_185, %c0_186] : memref<1x32xf32, #tpu.memory_space<vmem>>, vector<1x32xf32>
    %306 = vector.broadcast %305 : vector<1x32xf32> to vector<16x32xf32>
    %307 = arith.addf %304, %306 : vector<16x32xf32>
    %308 = arith.addf %262, %307 : vector<16x32xf32>
    %c0_187 = arith.constant 0 : index
    %c0_188 = arith.constant 0 : index
    %309 = vector.load %arg23[%c0_187, %c0_188] : memref<1x32xf32, #tpu.memory_space<vmem>>, vector<1x32xf32>
    %c0_189 = arith.constant 0 : index
    %c0_190 = arith.constant 0 : index
    %310 = vector.load %arg24[%c0_189, %c0_190] : memref<1x32xf32, #tpu.memory_space<vmem>>, vector<1x32xf32>
    %cst_191 = arith.constant dense<0.000000e+00> : vector<16xf32>
    %311 = vector.multi_reduction <add>, %308, %cst_191 [1] : vector<16x32xf32> to vector<16xf32>
    %312 = vector.shape_cast %311 : vector<16xf32> to vector<16x1xf32>
    %cst_192 = arith.constant 3.200000e+01 : f32
    %313 = vector.broadcast %cst_192 : f32 to vector<16x1xf32>
    %314 = arith.divf %312, %313 : vector<16x1xf32>
    %315 = vector.broadcast %314 : vector<16x1xf32> to vector<16x32xf32>
    %316 = arith.subf %308, %315 : vector<16x32xf32>
    %317 = arith.mulf %316, %316 : vector<16x32xf32>
    %cst_193 = arith.constant dense<0.000000e+00> : vector<16xf32>
    %318 = vector.multi_reduction <add>, %317, %cst_193 [1] : vector<16x32xf32> to vector<16xf32>
    %319 = vector.shape_cast %318 : vector<16xf32> to vector<16x1xf32>
    %cst_194 = arith.constant 3.200000e+01 : f32
    %320 = vector.broadcast %cst_194 : f32 to vector<16x1xf32>
    %321 = arith.divf %319, %320 : vector<16x1xf32>
    %cst_195 = arith.constant 9.99999996E-13 : f32
    %322 = vector.broadcast %cst_195 : f32 to vector<16x1xf32>
    %323 = arith.addf %321, %322 : vector<16x1xf32>
    %324 = math.rsqrt %323 : vector<16x1xf32>
    %325 = vector.broadcast %324 : vector<16x1xf32> to vector<16x32xf32>
    %326 = arith.mulf %316, %325 : vector<16x32xf32>
    %327 = vector.broadcast %309 : vector<1x32xf32> to vector<16x32xf32>
    %328 = arith.mulf %326, %327 : vector<16x32xf32>
    %329 = vector.broadcast %310 : vector<1x32xf32> to vector<16x32xf32>
    %330 = arith.addf %328, %329 : vector<16x32xf32>
    %331 = arith.truncf %330 : vector<16x32xf32> to vector<16x32xbf16>
    %c0_196 = arith.constant 0 : index
    %c0_197 = arith.constant 0 : index
    %332 = vector.load %arg25[%c0_196, %c0_197] : memref<32x64xbf16, #tpu.memory_space<vmem>>, vector<32x64xbf16>
    %cst_198 = arith.constant dense<0.000000e+00> : vector<16x64xf32>
    %333 = tpu.matmul %331, %332, %cst_198 {dimension_numbers = #tpu.dot_dimension_numbers<[1], [0], [0], [1], [0, 0, 1, 1], [], []>} : vector<16x32xbf16>, vector<32x64xbf16>, vector<16x64xf32> -> vector<16x64xf32>
    %c0_199 = arith.constant 0 : index
    %c0_200 = arith.constant 0 : index
    %334 = vector.load %arg26[%c0_199, %c0_200] : memref<1x64xf32, #tpu.memory_space<vmem>>, vector<1x64xf32>
    %335 = vector.broadcast %334 : vector<1x64xf32> to vector<16x64xf32>
    %336 = arith.addf %333, %335 : vector<16x64xf32>
    %cst_201 = arith.constant 5.000000e-01 : f32
    %337 = vector.broadcast %cst_201 : f32 to vector<16x64xf32>
    %338 = arith.mulf %337, %336 : vector<16x64xf32>
    %cst_202 = arith.constant 0.707106769 : f32
    %339 = vector.broadcast %cst_202 : f32 to vector<16x64xf32>
    %340 = arith.mulf %336, %339 : vector<16x64xf32>
    %cst_203 = arith.constant 0.000000e+00 : f32
    %341 = vector.broadcast %cst_203 : f32 to vector<16x64xf32>
    %342 = arith.cmpf olt, %340, %341 : vector<16x64xf32>
    %cst_204 = arith.constant -1.000000e+00 : f32
    %cst_205 = arith.constant 1.000000e+00 : f32
    %343 = vector.broadcast %cst_204 : f32 to vector<16x64xf32>
    %344 = vector.broadcast %cst_205 : f32 to vector<16x64xf32>
    %345 = arith.select %342, %343, %344 : vector<16x64xi1>, vector<16x64xf32>
    %346 = math.absf %340 : vector<16x64xf32>
    %cst_206 = arith.constant 0.327591091 : f32
    %347 = vector.broadcast %cst_206 : f32 to vector<16x64xf32>
    %348 = arith.mulf %347, %346 : vector<16x64xf32>
    %cst_207 = arith.constant 1.000000e+00 : f32
    %349 = vector.broadcast %cst_207 : f32 to vector<16x64xf32>
    %350 = arith.addf %349, %348 : vector<16x64xf32>
    %351 = tpu.reciprocal %350 {approx = true} : vector<16x64xf32> -> vector<16x64xf32>
    %cst_208 = arith.constant 1.06140542 : f32
    %352 = vector.broadcast %cst_208 : f32 to vector<16x64xf32>
    %353 = arith.mulf %352, %351 : vector<16x64xf32>
    %cst_209 = arith.constant -1.45315206 : f32
    %354 = vector.broadcast %cst_209 : f32 to vector<16x64xf32>
    %355 = arith.addf %353, %354 : vector<16x64xf32>
    %356 = arith.mulf %355, %351 : vector<16x64xf32>
    %cst_210 = arith.constant 1.42141378 : f32
    %357 = vector.broadcast %cst_210 : f32 to vector<16x64xf32>
    %358 = arith.addf %356, %357 : vector<16x64xf32>
    %359 = arith.mulf %358, %351 : vector<16x64xf32>
    %cst_211 = arith.constant -0.284496725 : f32
    %360 = vector.broadcast %cst_211 : f32 to vector<16x64xf32>
    %361 = arith.addf %359, %360 : vector<16x64xf32>
    %362 = arith.mulf %361, %351 : vector<16x64xf32>
    %cst_212 = arith.constant 0.254829586 : f32
    %363 = vector.broadcast %cst_212 : f32 to vector<16x64xf32>
    %364 = arith.addf %362, %363 : vector<16x64xf32>
    %365 = arith.mulf %364, %351 : vector<16x64xf32>
    %cst_213 = arith.constant 0.000000e+00 : f32
    %366 = vector.broadcast %cst_213 : f32 to vector<16x64xf32>
    %367 = arith.subf %366, %346 : vector<16x64xf32>
    %368 = arith.mulf %367, %346 : vector<16x64xf32>
    %369 = math.exp %368 : vector<16x64xf32>
    %370 = arith.mulf %365, %369 : vector<16x64xf32>
    %cst_214 = arith.constant 1.000000e+00 : f32
    %371 = vector.broadcast %cst_214 : f32 to vector<16x64xf32>
    %372 = arith.subf %371, %370 : vector<16x64xf32>
    %373 = arith.mulf %345, %372 : vector<16x64xf32>
    %cst_215 = arith.constant 1.000000e+00 : f32
    %374 = vector.broadcast %cst_215 : f32 to vector<16x64xf32>
    %375 = arith.addf %374, %373 : vector<16x64xf32>
    %376 = arith.mulf %338, %375 : vector<16x64xf32>
    %377 = arith.truncf %376 : vector<16x64xf32> to vector<16x64xbf16>
    %c0_216 = arith.constant 0 : index
    %c0_217 = arith.constant 0 : index
    %378 = vector.load %arg27[%c0_216, %c0_217] : memref<64x32xbf16, #tpu.memory_space<vmem>>, vector<64x32xbf16>
    %cst_218 = arith.constant dense<0.000000e+00> : vector<16x32xf32>
    %379 = tpu.matmul %377, %378, %cst_218 {dimension_numbers = #tpu.dot_dimension_numbers<[1], [0], [0], [1], [0, 0, 1, 1], [], []>} : vector<16x64xbf16>, vector<64x32xbf16>, vector<16x32xf32> -> vector<16x32xf32>
    %c0_219 = arith.constant 0 : index
    %c0_220 = arith.constant 0 : index
    %380 = vector.load %arg28[%c0_219, %c0_220] : memref<1x32xf32, #tpu.memory_space<vmem>>, vector<1x32xf32>
    %381 = vector.broadcast %380 : vector<1x32xf32> to vector<16x32xf32>
    %382 = arith.addf %379, %381 : vector<16x32xf32>
    %383 = arith.addf %330, %382 : vector<16x32xf32>
    %c0_221 = arith.constant 0 : index
    %c0_222 = arith.constant 0 : index
    %384 = vector.load %arg29[%c0_221, %c0_222] : memref<1x32xf32, #tpu.memory_space<vmem>>, vector<1x32xf32>
    %c0_223 = arith.constant 0 : index
    %c0_224 = arith.constant 0 : index
    %385 = vector.load %arg30[%c0_223, %c0_224] : memref<1x32xf32, #tpu.memory_space<vmem>>, vector<1x32xf32>
    %cst_225 = arith.constant dense<0.000000e+00> : vector<16xf32>
    %386 = vector.multi_reduction <add>, %383, %cst_225 [1] : vector<16x32xf32> to vector<16xf32>
    %387 = vector.shape_cast %386 : vector<16xf32> to vector<16x1xf32>
    %cst_226 = arith.constant 3.200000e+01 : f32
    %388 = vector.broadcast %cst_226 : f32 to vector<16x1xf32>
    %389 = arith.divf %387, %388 : vector<16x1xf32>
    %390 = vector.broadcast %389 : vector<16x1xf32> to vector<16x32xf32>
    %391 = arith.subf %383, %390 : vector<16x32xf32>
    %392 = arith.mulf %391, %391 : vector<16x32xf32>
    %cst_227 = arith.constant dense<0.000000e+00> : vector<16xf32>
    %393 = vector.multi_reduction <add>, %392, %cst_227 [1] : vector<16x32xf32> to vector<16xf32>
    %394 = vector.shape_cast %393 : vector<16xf32> to vector<16x1xf32>
    %cst_228 = arith.constant 3.200000e+01 : f32
    %395 = vector.broadcast %cst_228 : f32 to vector<16x1xf32>
    %396 = arith.divf %394, %395 : vector<16x1xf32>
    %cst_229 = arith.constant 9.99999996E-13 : f32
    %397 = vector.broadcast %cst_229 : f32 to vector<16x1xf32>
    %398 = arith.addf %396, %397 : vector<16x1xf32>
    %399 = math.rsqrt %398 : vector<16x1xf32>
    %400 = vector.broadcast %399 : vector<16x1xf32> to vector<16x32xf32>
    %401 = arith.mulf %391, %400 : vector<16x32xf32>
    %402 = vector.broadcast %384 : vector<1x32xf32> to vector<16x32xf32>
    %403 = arith.mulf %401, %402 : vector<16x32xf32>
    %404 = vector.broadcast %385 : vector<1x32xf32> to vector<16x32xf32>
    %405 = arith.addf %403, %404 : vector<16x32xf32>
    %406 = vector.extract_strided_slice %405 {offsets = [0, 0], sizes = [1, 32], strides = [1, 1]} : vector<16x32xf32> to vector<1x32xf32>
    %407 = vector.extract_strided_slice %405 {offsets = [8, 0], sizes = [1, 32], strides = [1, 1]} : vector<16x32xf32> to vector<1x32xf32>
    %408 = tpu.concatenate %406, %407 in 0 : vector<1x32xf32>, vector<1x32xf32> -> vector<2x32xf32>
    %409 = arith.truncf %408 : vector<2x32xf32> to vector<2x32xbf16>
    %c0_230 = arith.constant 0 : index
    %c0_231 = arith.constant 0 : index
    %410 = vector.load %arg31[%c0_230, %c0_231] : memref<32x3xbf16, #tpu.memory_space<vmem>>, vector<32x3xbf16>
    %cst_232 = arith.constant dense<0.000000e+00> : vector<2x3xf32>
    %411 = tpu.matmul %409, %410, %cst_232 {dimension_numbers = #tpu.dot_dimension_numbers<[1], [0], [0], [1], [0, 0, 1, 1], [], []>} : vector<2x32xbf16>, vector<32x3xbf16>, vector<2x3xf32> -> vector<2x3xf32>
    %c0_233 = arith.constant 0 : index
    %c0_234 = arith.constant 0 : index
    %412 = vector.load %arg32[%c0_233, %c0_234] : memref<1x3xf32, #tpu.memory_space<vmem>>, vector<1x3xf32>
    %413 = vector.broadcast %412 : vector<1x3xf32> to vector<2x3xf32>
    %414 = arith.addf %411, %413 : vector<2x3xf32>
    %415 = arith.negf %414 : vector<2x3xf32>
    %416 = math.exp %415 : vector<2x3xf32>
    %cst_235 = arith.constant 1.000000e+00 : f32
    %417 = vector.broadcast %cst_235 : f32 to vector<2x3xf32>
    %418 = arith.addf %417, %416 : vector<2x3xf32>
    %419 = arith.divf %417, %418 : vector<2x3xf32>
    %c0_236 = arith.constant 0 : index
    %c0_237 = arith.constant 0 : index
    %420 = vector.load %arg33[%c0_236, %c0_237] : memref<2x3xf32, #tpu.memory_space<vmem>>, vector<2x3xf32>
    tpu.vector_store %arg33[%c0_236, %c0_237], %419 {strides = array<i32>} : memref<2x3xf32, #tpu.memory_space<vmem>>, vector<2x3xf32>,
    return
  }
  func.func @transform_0(%arg0: i32, %arg1: memref<2x8xi32, #tpu.memory_space<smem>>) -> (i32, i32) {
    %c0_i32 = arith.constant 0 : i32
    %c0_i32_0 = arith.constant 0 : i32
    %c0_i32_1 = arith.constant 0 : i32
    return %c0_i32, %c0_i32_0 : i32, i32
  }
  func.func @transform_1(%arg0: i32, %arg1: memref<2x8xi32, #tpu.memory_space<smem>>) -> (i32, i32) {
    %c0_i32 = arith.constant 0 : i32
    %c0_i32_0 = arith.constant 0 : i32
    %c0_i32_1 = arith.constant 0 : i32
    return %c0_i32, %c0_i32_0 : i32, i32
  }
  func.func @transform_2(%arg0: i32, %arg1: memref<2x8xi32, #tpu.memory_space<smem>>) -> (i32, i32) {
    %c0_i32 = arith.constant 0 : i32
    %c0_i32_0 = arith.constant 0 : i32
    %c0_i32_1 = arith.constant 0 : i32
    return %c0_i32, %c0_i32_0 : i32, i32
  }
  func.func @transform_3(%arg0: i32, %arg1: memref<2x8xi32, #tpu.memory_space<smem>>) -> (i32, i32) {
    %c0_i32 = arith.constant 0 : i32
    %c0_i32_0 = arith.constant 0 : i32
    %c0_i32_1 = arith.constant 0 : i32
    return %c0_i32, %c0_i32_0 : i32, i32
  }
  func.func @transform_4(%arg0: i32, %arg1: memref<2x8xi32, #tpu.memory_space<smem>>) -> (i32, i32) {
    %c0_i32 = arith.constant 0 : i32
    %c0_i32_0 = arith.constant 0 : i32
    %c0_i32_1 = arith.constant 0 : i32
    return %c0_i32, %c0_i32_0 : i32, i32
  }
  func.func @transform_5(%arg0: i32, %arg1: memref<2x8xi32, #tpu.memory_space<smem>>) -> (i32, i32) {
    %c0_i32 = arith.constant 0 : i32
    %c0_i32_0 = arith.constant 0 : i32
    %c0_i32_1 = arith.constant 0 : i32
    return %c0_i32, %c0_i32_0 : i32, i32
  }
  func.func @transform_6(%arg0: i32, %arg1: memref<2x8xi32, #tpu.memory_space<smem>>) -> (i32, i32) {
    %c0_i32 = arith.constant 0 : i32
    %c0_i32_0 = arith.constant 0 : i32
    %c0_i32_1 = arith.constant 0 : i32
    return %c0_i32, %c0_i32_0 : i32, i32
  }
  func.func @transform_7(%arg0: i32, %arg1: memref<2x8xi32, #tpu.memory_space<smem>>) -> (i32, i32) {
    %c0_i32 = arith.constant 0 : i32
    %c0_i32_0 = arith.constant 0 : i32
    %c0_i32_1 = arith.constant 0 : i32
    return %c0_i32, %c0_i32_0 : i32, i32
  }
  func.func @transform_8(%arg0: i32, %arg1: memref<2x8xi32, #tpu.memory_space<smem>>) -> (i32, i32) {
    %c0_i32 = arith.constant 0 : i32
    %c0_i32_0 = arith.constant 0 : i32
    %c0_i32_1 = arith.constant 0 : i32
    return %c0_i32, %c0_i32_0 : i32, i32
  }
  func.func @transform_9(%arg0: i32, %arg1: memref<2x8xi32, #tpu.memory_space<smem>>) -> (i32, i32) {
    %c0_i32 = arith.constant 0 : i32
    %c0_i32_0 = arith.constant 0 : i32
    %c0_i32_1 = arith.constant 0 : i32
    return %c0_i32, %c0_i32_0 : i32, i32
  }
  func.func @transform_10(%arg0: i32, %arg1: memref<2x8xi32, #tpu.memory_space<smem>>) -> (i32, i32) {
    %c0_i32 = arith.constant 0 : i32
    %c0_i32_0 = arith.constant 0 : i32
    %c0_i32_1 = arith.constant 0 : i32
    return %c0_i32, %c0_i32_0 : i32, i32
  }
  func.func @transform_11(%arg0: i32, %arg1: memref<2x8xi32, #tpu.memory_space<smem>>) -> (i32, i32) {
    %c0_i32 = arith.constant 0 : i32
    %c0_i32_0 = arith.constant 0 : i32
    %c0_i32_1 = arith.constant 0 : i32
    return %c0_i32, %c0_i32_0 : i32, i32
  }
  func.func @transform_12(%arg0: i32, %arg1: memref<2x8xi32, #tpu.memory_space<smem>>) -> (i32, i32) {
    %c0_i32 = arith.constant 0 : i32
    %c0_i32_0 = arith.constant 0 : i32
    %c0_i32_1 = arith.constant 0 : i32
    return %c0_i32, %c0_i32_0 : i32, i32
  }
  func.func @transform_13(%arg0: i32, %arg1: memref<2x8xi32, #tpu.memory_space<smem>>) -> (i32, i32) {
    %c0_i32 = arith.constant 0 : i32
    %c0_i32_0 = arith.constant 0 : i32
    %c0_i32_1 = arith.constant 0 : i32
    return %c0_i32, %c0_i32_0 : i32, i32
  }
  func.func @transform_14(%arg0: i32, %arg1: memref<2x8xi32, #tpu.memory_space<smem>>) -> (i32, i32) {
    %c0_i32 = arith.constant 0 : i32
    %c0_i32_0 = arith.constant 0 : i32
    %c0_i32_1 = arith.constant 0 : i32
    return %c0_i32, %c0_i32_0 : i32, i32
  }
  func.func @transform_15(%arg0: i32, %arg1: memref<2x8xi32, #tpu.memory_space<smem>>) -> (i32, i32) {
    %c0_i32 = arith.constant 0 : i32
    %c0_i32_0 = arith.constant 0 : i32
    %c0_i32_1 = arith.constant 0 : i32
    return %c0_i32, %c0_i32_0 : i32, i32
  }
  func.func @transform_16(%arg0: i32, %arg1: memref<2x8xi32, #tpu.memory_space<smem>>) -> (i32, i32) {
    %c0_i32 = arith.constant 0 : i32
    %c0_i32_0 = arith.constant 0 : i32
    %c0_i32_1 = arith.constant 0 : i32
    return %c0_i32, %c0_i32_0 : i32, i32
  }
  func.func @transform_17(%arg0: i32, %arg1: memref<2x8xi32, #tpu.memory_space<smem>>) -> (i32, i32) {
    %c0_i32 = arith.constant 0 : i32
    %c0_i32_0 = arith.constant 0 : i32
    %c0_i32_1 = arith.constant 0 : i32
    return %c0_i32, %c0_i32_0 : i32, i32
  }
  func.func @transform_18(%arg0: i32, %arg1: memref<2x8xi32, #tpu.memory_space<smem>>) -> (i32, i32) {
    %c0_i32 = arith.constant 0 : i32
    %c0_i32_0 = arith.constant 0 : i32
    %c0_i32_1 = arith.constant 0 : i32
    return %c0_i32, %c0_i32_0 : i32, i32
  }
  func.func @transform_19(%arg0: i32, %arg1: memref<2x8xi32, #tpu.memory_space<smem>>) -> (i32, i32) {
    %c0_i32 = arith.constant 0 : i32
    %c0_i32_0 = arith.constant 0 : i32
    %c0_i32_1 = arith.constant 0 : i32
    return %c0_i32, %c0_i32_0 : i32, i32
  }
  func.func @transform_20(%arg0: i32, %arg1: memref<2x8xi32, #tpu.memory_space<smem>>) -> (i32, i32) {
    %c0_i32 = arith.constant 0 : i32
    %c0_i32_0 = arith.constant 0 : i32
    %c0_i32_1 = arith.constant 0 : i32
    return %c0_i32, %c0_i32_0 : i32, i32
  }
  func.func @transform_21(%arg0: i32, %arg1: memref<2x8xi32, #tpu.memory_space<smem>>) -> (i32, i32) {
    %c0_i32 = arith.constant 0 : i32
    %c0_i32_0 = arith.constant 0 : i32
    %c0_i32_1 = arith.constant 0 : i32
    return %c0_i32, %c0_i32_0 : i32, i32
  }
  func.func @transform_22(%arg0: i32, %arg1: memref<2x8xi32, #tpu.memory_space<smem>>) -> (i32, i32) {
    %c0_i32 = arith.constant 0 : i32
    %c0_i32_0 = arith.constant 0 : i32
    %c0_i32_1 = arith.constant 0 : i32
    return %c0_i32, %c0_i32_0 : i32, i32
  }
  func.func @transform_23(%arg0: i32, %arg1: memref<2x8xi32, #tpu.memory_space<smem>>) -> (i32, i32) {
    %c0_i32 = arith.constant 0 : i32
    %c0_i32_0 = arith.constant 0 : i32
    %c0_i32_1 = arith.constant 0 : i32
    return %c0_i32, %c0_i32_0 : i32, i32
  }
  func.func @transform_24(%arg0: i32, %arg1: memref<2x8xi32, #tpu.memory_space<smem>>) -> (i32, i32) {
    %c0_i32 = arith.constant 0 : i32
    %c0_i32_0 = arith.constant 0 : i32
    %c0_i32_1 = arith.constant 0 : i32
    return %c0_i32, %c0_i32_0 : i32, i32
  }
  func.func @transform_25(%arg0: i32, %arg1: memref<2x8xi32, #tpu.memory_space<smem>>) -> (i32, i32) {
    %c0_i32 = arith.constant 0 : i32
    %c0_i32_0 = arith.constant 0 : i32
    %c0_i32_1 = arith.constant 0 : i32
    return %c0_i32, %c0_i32_0 : i32, i32
  }
  func.func @transform_26(%arg0: i32, %arg1: memref<2x8xi32, #tpu.memory_space<smem>>) -> (i32, i32) {
    %c0_i32 = arith.constant 0 : i32
    %c0_i32_0 = arith.constant 0 : i32
    %c0_i32_1 = arith.constant 0 : i32
    return %c0_i32, %c0_i32_0 : i32, i32
  }
  func.func @transform_27(%arg0: i32, %arg1: memref<2x8xi32, #tpu.memory_space<smem>>) -> (i32, i32) {
    %c0_i32 = arith.constant 0 : i32
    %c0_i32_0 = arith.constant 0 : i32
    %c0_i32_1 = arith.constant 0 : i32
    return %c0_i32, %c0_i32_0 : i32, i32
  }
  func.func @transform_28(%arg0: i32, %arg1: memref<2x8xi32, #tpu.memory_space<smem>>) -> (i32, i32) {
    %c0_i32 = arith.constant 0 : i32
    %c0_i32_0 = arith.constant 0 : i32
    %c0_i32_1 = arith.constant 0 : i32
    return %c0_i32, %c0_i32_0 : i32, i32
  }
  func.func @transform_29(%arg0: i32, %arg1: memref<2x8xi32, #tpu.memory_space<smem>>) -> (i32, i32) {
    %c0_i32 = arith.constant 0 : i32
    %c0_i32_0 = arith.constant 0 : i32
    %c0_i32_1 = arith.constant 0 : i32
    return %c0_i32, %c0_i32_0 : i32, i32
  }
  func.func @transform_30(%arg0: i32, %arg1: memref<2x8xi32, #tpu.memory_space<smem>>) -> (i32, i32) {
    %c0_i32 = arith.constant 0 : i32
    %c0_i32_0 = arith.constant 0 : i32
    %c0_i32_1 = arith.constant 0 : i32
    return %c0_i32, %c0_i32_0 : i32, i32
  }
  func.func @transform_31(%arg0: i32, %arg1: memref<2x8xi32, #tpu.memory_space<smem>>) -> (i32, i32) {
    %c0_i32 = arith.constant 0 : i32
    %c0_i32_0 = arith.constant 0 : i32
    %c0_i32_1 = arith.constant 0 : i32
    return %c0_i32, %c0_i32_0 : i32, i32
  }
}

</mosaic_0001>

<bundles_post_ra>
// kernel: bert_classifier_forward.1
= control target key start
LH: loop header
LB: loop body
LE: loop exit
PB: predicated region body
PF: predicated region fallthrough
CT: control target
= control target key end

     0   :  { %s1874_s6 = smov 1   ;;  %s1875_s10 = smov 2   ;;  %s2384_s0 = inlined_call_operand.smem [shape: u32[33], index: -1, kind: input, shape index: {}] }
   0x1   :  { %s1924_s5 = sld [smem:[%s2384_s0]]   ;;  %s1876_s14 = smov 3  }
   0x2   :  { %s1929_s9 = sld [smem:[%s2384_s0 + %s1874_s6]]   ;;  %s1877_s18 = smov 4  }
   0x3   :  { %s1934_s13 = sld [smem:[%s2384_s0 + %s1875_s10]]   ;;  %s1878_s22 = smov 5  }
   0x4   :  { %s1939_s17 = sld [smem:[%s2384_s0 + %s1876_s14]]   ;;  %s1879_s26 = smov 6  }
   0x5   :  { %s1944_s21 = sld [smem:[%s2384_s0 + %s1877_s18]]   ;;  %s1880_s30 = smov 7  }
   0x6   :  { %s1949_s25 = sld [smem:[%s2384_s0 + %s1878_s22]]   ;;  %s1881_s4 = smov 8  }
   0x7   :  { %s1954_s29 = sld [smem:[%s2384_s0 + %s1879_s26]]   ;;  %s1882_s10 = smov 9  }
   0x8   :  { %s1959_s3 = sld [smem:[%s2384_s0 + %s1880_s30]]   ;;  %s1883_s15 = smov 10  }
   0x9   :  { %s1964_s8 = sld [smem:[%s2384_s0 + %s1881_s4]]   ;;  %s1884_s20 = smov 11  }
   0xa   :  { %s1969_s14 = sld [smem:[%s2384_s0 + %s1882_s10]]   ;;  %s1885_s26 = smov 12  }
   0xb   :  { %s1974_s19 = sld [smem:[%s2384_s0 + %s1883_s15]]   ;;  %s1886_s1 = smov 13  }
   0xc   :  { %s1979_s24 = sld [smem:[%s2384_s0 + %s1884_s20]]   ;;  %s1887_s7 = smov 14  }
   0xd   :  { %s1984_s30 = sld [smem:[%s2384_s0 + %s1885_s26]]   ;;  %s1888_s15 = smov 15  }
   0xe   :  { %s1989_s6 = sld [smem:[%s2384_s0 + %s1886_s1]]   ;;  %s1889_s22 = smov 16  }
   0xf   :  { %s1994_s12 = sld [smem:[%s2384_s0 + %s1887_s7]]   ;;  %s1890_s28 = smov 17  }
  0x10   :  { %s1999_s20 = sld [smem:[%s2384_s0 + %s1888_s15]]   ;;  %s1891_s7 = smov 18  }
  0x11   :  { %s2004_s27 = sld [smem:[%s2384_s0 + %s1889_s22]]   ;;  %s1892_s15 = smov 19  }
  0x12   :  { %s2009_s4 = sld [smem:[%s2384_s0 + %s1890_s28]]   ;;  %s1893_s22 = smov 20  }
  0x13   :  { %s1894_s28 = smov 21   ;;  %s1904_s18 = smov 31  }
  0x14   :  { %s1905_s26 = smov 32  }
  0x15   :  { %2390 = sst [smem:[#allocation9_spill]] %s1994_s12 }
  0x16   :  { %2391 = sst [smem:[#allocation10_spill]] %s1999_s20 }
  0x17   :  { %2392 = sst [smem:[#allocation11_spill]] %s2004_s27 }
  0x18   :  { %2393 = sst [smem:[#allocation12_spill]] %s2009_s4 }
  0x19   :  { %s2014_s12 = sld [smem:[%s2384_s0 + %s1891_s7]]   ;;  %s1895_s7 = smov 22  }
  0x1a   :  { %s2019_s20 = sld [smem:[%s2384_s0 + %s1892_s15]]   ;;  %s1896_s15 = smov 23  }
  0x1b   :  { %s2024_s27 = sld [smem:[%s2384_s0 + %s1893_s22]]   ;;  %s1897_s22 = smov 24  }
  0x1c   :  { %s2029_s4 = sld [smem:[%s2384_s0 + %s1894_s28]]   ;;  %s1898_s28 = smov 25  }
  0x1d   :  { %s2039_s23 = sld [smem:[%s2384_s0 + %s1896_s15]]   ;;  %s1900_s15 = smov 27  }
  0x1e   :  { %s2044_s1 = sld [smem:[%s2384_s0 + %s1897_s22]]  }
  0x1f   :  { %2394 = sst [smem:[#allocation13_spill]] %s2014_s12 }
  0x20   :  { %2395 = sst [smem:[#allocation14_spill]] %s2019_s20 }
  0x21   :  { %2396 = sst [smem:[#allocation15_spill]] %s2024_s27  ;;  %s1901_s27 = smov 28  }
  0x22   :  { %2397 = sst [smem:[#allocation16_spill]] %s2029_s4 }
  0x23   :  { %s2034_s12 = sld [smem:[%s2384_s0 + %s1895_s7]]   ;;  %s1899_s7 = smov 26  }
  0x24   :  { %2399 = sst [smem:[#allocation18_spill]] %s2039_s23 }
  0x25   :  { %2400 = sst [smem:[#allocation19_spill]] %s2044_s1 }
  0x26   :  { %s2049_s10 = sld [smem:[%s2384_s0 + %s1898_s28]]   ;;  %s1902_s28 = smov 29  }
  0x27   :  { %s2054_s16 = sld [smem:[%s2384_s0 + %s1899_s7]]   ;;  %s1903_s7 = smov 30  }
  0x28   :  { %s2059_s20 = sld [smem:[%s2384_s0 + %s1900_s15]]   ;;  %s71_s15 = sshll.u32 %s1924_s5, 4  ;;  %s72_s15 = int_to_ptr.vmem [resolvable:$true] %s71_s15 }
  0x29   :  { %2398 = sst [smem:[#allocation17_spill]] %s2034_s12 }
  0x2a   :  { %s2064_s4 = sld [smem:[%s2384_s0 + %s1901_s27]]  }
  0x2b   :  { %s2069_s12 = sld [smem:[%s2384_s0 + %s1902_s28]]   ;;  %s1834_s28 = sshra.s32 %s72_s15, 4  ;;  %s1835_s28 = int_to_ptr.vmem [resolvable:$true] %s1834_s28 }
  0x2c   :  { %2401 = sst [smem:[#allocation20_spill]] %s2049_s10  ;;  %s1836_s2 = scalar_lea.vmem %s1835_s28, 2 }
  0x2d   :  { %2402 = sst [smem:[#allocation21_spill]] %s2054_s16  ;;  %p1837_p0 = scmp.ne.s32.totalorder %s1835_s28, %s1836_s2 }
  0x2e   :  { %2403 = sst [smem:[#allocation22_spill]] %s2059_s20  ;;  %s1838_s16 = scalar_lea.vmem %s1924_s5, 2 }
  0x2f   :  { %s2074_s23 = sld [smem:[%s2384_s0 + %s1903_s7]]   ;;  %p1839_p1 = scmp.lt.s32.totalorder %s1835_s28, %s1924_s5 }
  0x30   :  { %2404 = sst [smem:[#allocation23_spill]] %s2064_s4  ;;  %p1840_p2 = scmp.lt.s32.totalorder %s1838_s16, %s1836_s2 }
  0x31   :  { %s2080_s27 = sld [smem:[%s2384_s0 + %s1904_s18]]  }
  0x32   :  { %s2085_s10 = sld [smem:[%s2384_s0 + %s1905_s26]]   ;;  %p1841_p3 = por %p1840_p2, %p1839_p1 }
  0x34   :  { %p1842_p4 = pnand %p1841_p3, %p1837_p0 }
  0x36   :  { %1845 = shalt.err (!%p1842_p4)  }
  0x37   :  { %s1906_s20 = smov [#allocation4]  }
  0x38   :  { %74 = dma.vmem_to_smem %s72_s15, 32, %s1906_s20, [#allocation3] }
  0x39   :  { %1870 = dma.done.wait [#allocation3], 32 }
  0x3a   :  { %1871 = vsyncadd [#allocation3], 4294967264 }
  0x3b   :  { %77 = sfence }
  0x3c   :  { %s142_s7 = sld [smem:[#allocation4]]  ;;  %v145_v0 = vld [vmem:[%s1934_s13] sm:$0x1]  ;;  %vm147_vm0 = vcmask 253952   ;;  %v152_v1 = vld [vmem:[%s1934_s13 + $0x1] sm:$0x1] }
  0x3d   :  { %s1508_s0 = sld [smem:[#allocation4 + $0x1]]  ;;  %v158_v2 = vld [vmem:[%s1934_s13 + $0x2] sm:$0x1]  ;;  %v164_v3 = vld [vmem:[%s1934_s13 + $0x3] sm:$0x1]  ;;  %vm243_vm1 = vcmask 261120  }
  0x3e   :  { %s1509_s1 = sld [smem:[#allocation4 + $0x2]]  ;;  %v170_v5 = vld [vmem:[%s1934_s13 + $0x4] sm:$0x1]  ;;  %v176_v8 = vld [vmem:[%s1934_s13 + $0x5] sm:$0x1] }
  0x3f   :  { %s1510_s5 = sld [smem:[#allocation4 + $0x3]]  ;;  %v182_v11 = vld [vmem:[%s1934_s13 + $0x6] sm:$0x1]  ;;  %v188_v14 = vld [vmem:[%s1934_s13 + $0x7] sm:$0x1] }
  0x40   :  { %s2090_s4 = sld [smem:[#allocation4 + $0x4]]  ;;  %v194_v17 = vld [vmem:[%s1934_s13] sm:$0x1]  ;;  %v200_v20 = vld [vmem:[%s1934_s13 + $0x1] sm:$0x1] }
  0x41   :  { %s2093_s11 = sld [smem:[#allocation4 + $0x5]]  ;;  %v206_v23 = vld [vmem:[%s1934_s13 + $0x2] sm:$0x1]  ;;  %v212_v26 = vld [vmem:[%s1934_s13 + $0x3] sm:$0x1] }
  0x42   :  { %s143_s15 = scalar_lea.vmem %s1929_s9, %s142_s7  ;;  %s2098_s18 = sld [smem:[#allocation4 + $0x6]]  ;;  %v218_v29 = vld [vmem:[%s1934_s13 + $0x4] sm:$0x1]  ;;  %v224_v32 = vld [vmem:[%s1934_s13 + $0x5] sm:$0x1] }
  0x43   :  { %v144_v4 = vld [vmem:[%s143_s15] sm:$0x1]  ;;  %s150_s22 = scalar_lea.vmem %s1929_s9, %s1508_s0  ;;  %s2102_s26 = sld [smem:[#allocation4 + $0x7]]  ;;  %v230_v35 = vld [vmem:[%s1934_s13 + $0x6] sm:$0x1] }
  0x44   :  { %v146_v6 = vadd.f32 %v145_v0, %v144_v4  ;;  %v151_v7 = vld [vmem:[%s150_s22] sm:$0x1]  ;;  %s156_s28 = scalar_lea.vmem %s1929_s9, %s1509_s1  ;;  %s2106_s2 = sld [smem:[#allocation4 + $0x80]]  ;;  %v236_v38 = vld [vmem:[%s1934_s13 + $0x7] sm:$0x1] }
  0x45   :  { %v153_v9 = vadd.f32 %v152_v1, %v151_v7  ;;  %v157_v10 = vld [vmem:[%s156_s28] sm:$0x1]  ;;  %s162_s16 = scalar_lea.vmem %s1929_s9, %s1510_s5  ;;  %s2110_s20 = sld [smem:[#allocation4 + $0x81]] }
  0x46   :  { %148 = vst.msk [vmem:[#allocation2] sm:$0x1] %vm147_vm0, %v146_v6  ;;  %v159_v12 = vadd.f32 %v158_v2, %v157_v10  ;;  %v163_v13 = vld [vmem:[%s162_s16] sm:$0x1]  ;;  %s168_s7 = scalar_lea.vmem %s1929_s9, %s2090_s4  ;;  %s2116_s0 = sld [smem:[#allocation4 + $0x82]] }
  0x47   :  { %154 = vst.msk [vmem:[#allocation2 + $0x1] sm:$0x1] %vm147_vm0, %v153_v9  ;;  %v165_v15 = vadd.f32 %v164_v3, %v163_v13  ;;  %v169_v16 = vld [vmem:[%s168_s7] sm:$0x1]  ;;  %s174_s1 = scalar_lea.vmem %s1929_s9, %s2093_s11  ;;  %s2122_s5 = sld [smem:[#allocation4 + $0x83]] }
  0x48   :  { %160 = vst.msk [vmem:[#allocation2 + $0x2] sm:$0x1] %vm147_vm0, %v159_v12  ;;  %v171_v18 = vadd.f32 %v170_v5, %v169_v16  ;;  %v175_v19 = vld [vmem:[%s174_s1] sm:$0x1]  ;;  %s180_s4 = scalar_lea.vmem %s1929_s9, %s2098_s18  ;;  %s2128_s15 = sld [smem:[#allocation4 + $0x84]] }
  0x49   :  { %166 = vst.msk [vmem:[#allocation2 + $0x3] sm:$0x1] %vm147_vm0, %v165_v15  ;;  %v177_v21 = vadd.f32 %v176_v8, %v175_v19  ;;  %v181_v22 = vld [vmem:[%s180_s4] sm:$0x1]  ;;  %s186_s11 = scalar_lea.vmem %s1929_s9, %s2102_s26  ;;  %s2134_s22 = sld [smem:[#allocation4 + $0x85]] }
  0x4a   :  { %172 = vst.msk [vmem:[#allocation2 + $0x4] sm:$0x1] %vm147_vm0, %v171_v18  ;;  %v183_v24 = vadd.f32 %v182_v11, %v181_v22  ;;  %v187_v25 = vld [vmem:[%s186_s11] sm:$0x1]  ;;  %s192_s18 = scalar_lea.vmem %s1929_s9, %s2106_s2  ;;  %s2140_s28 = sld [smem:[#allocation4 + $0x86]] }
  0x4b   :  { %178 = vst.msk [vmem:[#allocation2 + $0x5] sm:$0x1] %vm147_vm0, %v177_v21  ;;  %v189_v27 = vadd.f32 %v188_v14, %v187_v25  ;;  %v193_v28 = vld [vmem:[%s192_s18] sm:$0x1]  ;;  %s198_s26 = scalar_lea.vmem %s1929_s9, %s2110_s20  ;;  %s2146_s16 = sld [smem:[#allocation4 + $0x87]] }
  0x4c   :  { %184 = vst.msk [vmem:[#allocation2 + $0x6] sm:$0x1] %vm147_vm0, %v183_v24  ;;  %v195_v30 = vadd.f32 %v194_v17, %v193_v28  ;;  %v199_v31 = vld [vmem:[%s198_s26] sm:$0x1]  ;;  %s204_s2 = scalar_lea.vmem %s1929_s9, %s2116_s0 }
  0x4d   :  { %190 = vst.msk [vmem:[#allocation2 + $0x7] sm:$0x1] %vm147_vm0, %v189_v27  ;;  %v201_v33 = vadd.f32 %v200_v20, %v199_v31  ;;  %v205_v34 = vld [vmem:[%s204_s2] sm:$0x1]  ;;  %s210_s20 = scalar_lea.vmem %s1929_s9, %s2122_s5 }
  0x4e   :  { %196 = vst.msk [vmem:[#allocation2 + $0x8] sm:$0x1] %vm147_vm0, %v195_v30  ;;  %v207_v36 = vadd.f32 %v206_v23, %v205_v34  ;;  %v211_v37 = vld [vmem:[%s210_s20] sm:$0x1]  ;;  %s216_s7 = scalar_lea.vmem %s1929_s9, %s2128_s15 }
  0x4f   :  { %202 = vst.msk [vmem:[#allocation2 + $0x9] sm:$0x1] %vm147_vm0, %v201_v33  ;;  %v213_v39 = vadd.f32 %v212_v26, %v211_v37  ;;  %v217_v40 = vld [vmem:[%s216_s7] sm:$0x1]  ;;  %s222_s0 = scalar_lea.vmem %s1929_s9, %s2134_s22 }
  0x50   :  { %208 = vst.msk [vmem:[#allocation2 + $0xa] sm:$0x1] %vm147_vm0, %v207_v36  ;;  %v219_v41 = vadd.f32 %v218_v29, %v217_v40  ;;  %v223_v42 = vld [vmem:[%s222_s0] sm:$0x1]  ;;  %s228_s1 = scalar_lea.vmem %s1929_s9, %s2140_s28 }
  0x51   :  { %214 = vst.msk [vmem:[#allocation2 + $0xb] sm:$0x1] %vm147_vm0, %v213_v39  ;;  %v225_v43 = vadd.f32 %v224_v32, %v223_v42  ;;  %v229_v44 = vld [vmem:[%s228_s1] sm:$0x1]  ;;  %s234_s5 = scalar_lea.vmem %s1929_s9, %s2146_s16 }
  0x52   :  { %220 = vst.msk [vmem:[#allocation2 + $0xc] sm:$0x1] %vm147_vm0, %v219_v41  ;;  %v231_v45 = vadd.f32 %v230_v35, %v229_v44  ;;  %v235_v46 = vld [vmem:[%s234_s5] sm:$0x1] }
  0x53   :  { %226 = vst.msk [vmem:[#allocation2 + $0xd] sm:$0x1] %vm147_vm0, %v225_v43  ;;  %v237_v47 = vadd.f32 %v236_v38, %v235_v46 }
  0x54   :  { %v239_v48 = vld [vmem:[#allocation2] sm:$0xff]  ;;  %232 = vst.msk [vmem:[#allocation2 + $0xe] sm:$0x1] %vm147_vm0, %v231_v45 }
  0x55   :  { %v244_v49 = vsel %vm243_vm1, %v239_v48, 0.0  ;;  %238 = vst.msk [vmem:[#allocation2 + $0xf] sm:$0x1] %vm147_vm0, %v237_v47 }
  0x56   :  { %245 = vadd.xlane.f32.xlu0 %v244_v49 }
  0x57   :  { %78 = vsyncpa [#allocation6], 0  ;;  %v1907_v52 = vmov 32.0   ;;  %v1646_v5 = vld [vmem:[%s1954_s29 + $0x8] sm:$0xff]  ;;  %v1645_v7 = vld [vmem:[%s1954_s29] sm:$0xff]  ;;  %s1908_s9 = smov 80  }
  0x58   :  { %1760 = vrcp.f32 %v1907_v52  ;;  %337 = vmatpush.bf16.msra.mxu0 %v1646_v5  ;;  %v1741_v26 = vld [vmem:[%s1939_s17] ss:$0 sm:$0xff]  ;;  %s1909_s13 = smov 96   ;;  %s1910_s17 = smov 112   ;;  %vm351_vm9 = vcmask 130048  }
  0x59   :  { %v1742_v31 = vld [vmem:[%s1944_s21] ss:$0 sm:$0xff]  ;;  %s1911_s21 = smov 64   ;;  %s1913_s29 = smov 16  }
  0x5a   :  { %v1743_v36 = vld [vmem:[%s1959_s3] ss:$0 sm:$0xff]  ;;  %s2405_s3 = sld [smem:[#allocation9_spill]]  ;;  %s1451_s2 = sshll.u32 %s2085_s10, 4  ;;  %s1452_s2 = int_to_ptr.hbm [resolvable:$true] %s1451_s2 }
  0x5b   :  { %v2215_v52 = vld [vmem:[%s1949_s25] sm:$0xff]  ;;  %s2412_s4 = sld [smem:[#allocation16_spill]]  ;;  %s1862_s7 = scalar_lea.hbm %s2085_s10, 2 }
  0x5c   :  { %v240_v50 = vld [vmem:[#allocation2 + $0x8] sm:$0xff]  ;;  %338 = vmatpush.bf16.msra.mxu0 %v1645_v7  ;;  %s2413_s15 = sld [smem:[#allocation19_spill]] }
  0x5d   :  { %v247_v51 = vsel %vm243_vm1, %v240_v50, 0.0  ;;  %s2414_s11 = sld [smem:[#allocation17_spill]] }
  0x5e   :  { %248 = vadd.xlane.f32.xlu0 %v247_v51  ;;  %v1761_v53 = vpop.eup %1760  ;;  %s2415_s22 = sld [smem:[#allocation18_spill]] }
  0x5f   :  { %v251_v54 = vmul.f32 32.0, %v1761_v53  ;;  %vm255_vm2 = vweird.f32 %v1761_v53  ;;  %s2416_s18 = sld [smem:[#allocation20_spill]] }
  0x60   :  { %s2417_s28 = sld [smem:[#allocation21_spill]] }
  0x61   :  { %v252_v55 = vsub.f32 1.0, %v251_v54  ;;  %s2418_s26 = sld [smem:[#allocation22_spill]] }
  0x62   :  { %s2419_s16 = sld [smem:[#allocation23_spill]] }
  0x63   :  { %v253_v56 = vmul.f32 %v1761_v53, %v252_v55 }
  0x65   :  { %v254_v57 = vadd.f32 %v1761_v53, %v253_v56 }
  0x67   :  { %v2175_v58 = vsel %vm255_vm2, %v1761_v53, %v254_v57 }
  0xc9   :  { %v246_v59 = vpop.xlane.xlu0 %245 }
  0xca   :  { %v257_v60 = vmul.f32 %v2175_v58, %v246_v59 }
  0xcc   :  { %v259_v61 = vsub.f32 %v239_v48, %v257_v60  ;;  %v2210_v48 = vld [vmem:[%s1949_s25 + $0x8] sm:$0xff]  ;;  %s1912_s25 = smov 48  }
  0xce   :  { %v261_v62 = vmul.f32 %v259_v61, %v259_v61 }
  0xd0   :  { %v263_v63 = vsel %vm243_vm1, %v261_v62, 0.0 }
  0xd1   :  { %264 = vadd.xlane.f32.xlu1 %v263_v63  ;;  %v249_v0 = vpop.xlane.xlu0 %248 }
  0xd2   :  { %v258_v1 = vmul.f32 %v2175_v58, %v249_v0 }
  0xd4   :  { %v260_v2 = vsub.f32 %v240_v50, %v258_v1 }
  0xd6   :  { %v262_v3 = vmul.f32 %v260_v2, %v260_v2 }
  0xd8   :  { %v266_v4 = vsel %vm243_vm1, %v262_v3, 0.0 }
  0xd9   :  { %267 = vadd.xlane.f32.xlu1 %v266_v4 }
 0x144   :  { %v265_v6 = vpop.xlane.xlu1 %264 }
 0x145   :  { %v269_v8 = vmul.f32 %v265_v6, %v2175_v58 }
 0x147   :  { %v271_v9 = vadd.f32 1e-12, %v269_v8 }
 0x149   :  { %1762 = vrsqrt.f32 %v271_v9  ;;  %vm279_vm4 = vweird.f32 %v271_v9 }
 0x14c   :  { %v268_v10 = vpop.xlane.xlu1 %267 }
 0x14d   :  { %v270_v11 = vmul.f32 %v268_v10, %v2175_v58 }
 0x14f   :  { %v1763_v12 = vpop.eup %1762  ;;  %v272_v13 = vadd.f32 1e-12, %v270_v11 }
 0x150   :  { %v274_v14 = vmul.f32 %v1763_v12, %v271_v9  ;;  %vm280_vm3 = vweird.f32 %v1763_v12 }
 0x151   :  { %1764 = vrsqrt.f32 %v272_v13  ;;  %vm281_vm5 = vmor %vm279_vm4, %vm280_vm3  ;;  %vm289_vm7 = vweird.f32 %v272_v13  ;;  %vm769_vm3 = vcmask 523264  }
 0x152   :  { %v275_v15 = vmul.f32 %v1763_v12, %v274_v14 }
 0x154   :  { %v276_v16 = vmul.f32 0.5, %v275_v15 }
 0x156   :  { %v277_v17 = vsub.f32 1.5, %v276_v16 }
 0x157   :  { %v1765_v18 = vpop.eup %1764 }
 0x158   :  { %v278_v19 = vmul.f32 %v1763_v12, %v277_v17  ;;  %v284_v20 = vmul.f32 %v1765_v18, %v272_v13  ;;  %vm290_vm6 = vweird.f32 %v1765_v18 }
 0x159   :  { %vm291_vm8 = vmor %vm289_vm7, %vm290_vm6 }
 0x15a   :  { %v285_v21 = vmul.f32 %v1765_v18, %v284_v20  ;;  %v282_v22 = vsel %vm281_vm5, %v1763_v12, %v278_v19 }
 0x15b   :  { %v293_v25 = vmul.f32 %v282_v22, %v259_v61 }
 0x15c   :  { %v286_v23 = vmul.f32 0.5, %v285_v21 }
 0x15d   :  { %v298_v30 = vmul.f32 %v1741_v26, %v293_v25 }
 0x15e   :  { %v287_v24 = vsub.f32 1.5, %v286_v23 }
 0x15f   :  { %v2187_v33 = vadd.f32 %v1742_v31, %v298_v30 }
 0x160   :  { %v288_v27 = vmul.f32 %v1765_v18, %v287_v24 }
 0x162   :  { %v292_v28 = vsel %vm291_vm8, %v1765_v18, %v288_v27 }
 0x163   :  { %v294_v29 = vmul.f32 %v292_v28, %v260_v2 }
 0x165   :  { %v299_v32 = vmul.f32 %v1741_v26, %v294_v29 }
 0x167   :  { %v2189_v34 = vadd.f32 %v1742_v31, %v299_v32 }
 0x169   :  { %v307_v35 = vpack.c.bf16 %v2189_v34, %v2187_v33 }
 0x16b   :  { %1531 = vmatmul.msk.bf16.vlgmr.msra.gmra.mxu0 %vm243_vm1, %v307_v35 }
 0x1e8   :  { %v340_v37 = vpop.f32.mrf.mxu0 }
 0x1e9   :  { %v341_v38 = vadd.f32 %v1743_v36, %v340_v37 }
 0x1eb   :  { %444 = vrot.lane.b32.xlu1 %v341_v38, %s1908_s9 }
 0x1f0   :  { %v342_v39 = vpop.f32.mrf.mxu0 }
 0x1f1   :  { %v343_v40 = vadd.f32 %v1743_v36, %v342_v39  ;;  %v1648_v39 = vld [vmem:[%s1964_s8 + $0x8] sm:$0xff] }
 0x1f3   :  { %446 = vrot.lane.b32.xlu0 %v343_v40, %s1908_s9  ;;  %349 = vrot.lane.b32.xlu2 %v343_v40, %s1909_s13  ;;  %v1711_v62 = vpack.i.bf16 %v341_v38, %v343_v40 }
 0x1fb   :  { %347 = vrot.lane.b32.xlu2 %v341_v38, %s1909_s13 }
 0x203   :  { %440 = vrot.lane.b32.xlu2 %v341_v38, %s1910_s17 }
 0x20b   :  { %442 = vrot.lane.b32.xlu2 %v343_v40, %s1910_s17 }
 0x24d   :  { %v350_v41 = vpop.permute.xlu2 %349 }
 0x24e   :  { %1532 = vmatpush.xpose.msk.msra.mxu1 %vm351_vm9, %v350_v41 }
 0x255   :  { %v348_v42 = vpop.permute.xlu2 %347 }
 0x256   :  { %1533 = vmatpush.xpose.msk.msra.mxu1 %vm351_vm9, %v348_v42 }
 0x259   :  { %1534 = vmatmul.msk.f32.vlgmr.msra.gmra.mxu1 %vm351_vm9, %v341_v38 }
 0x25d   :  { %v445_v44 = vpop.permute.xlu1 %444  ;;  %v441_v45 = vpop.permute.xlu2 %440 }
 0x261   :  { %1535 = vmatmul.msk.f32.gmra.mxu1 %vm351_vm9, %v343_v40 }
 0x265   :  { %v447_v43 = vpop.permute.xlu0 %446  ;;  %v443_v46 = vpop.permute.xlu2 %442 }
 0x266   :  { %1538 = vmatpush.xpose.msk.msra.mxu3 %vm351_vm9, %v447_v43 }
 0x26a   :  { %1539 = vmatpush.xpose.msk.msra.mxu3 %vm351_vm9, %v445_v44  ;;  %v1647_v44 = vld [vmem:[%s1964_s8] sm:$0xff]  ;;  %s2406_s8 = sld [smem:[#allocation10_spill]] }
 0x26d   :  { %1540 = vmatmul.msk.f32.vlgmr.msra.gmra.mxu3 %vm351_vm9, %v441_v45 }
 0x275   :  { %1541 = vmatmul.msk.f32.gmra.mxu3 %vm351_vm9, %v443_v46 }
 0x2d6   :  { %v377_v47 = vpop.f32.mrf.mxu1 }
 0x2d7   :  { %v378_v60 = vadd.f32 %v377_v47, %v2215_v52 }
 0x2d9   :  { %v383_v61 = vsel %vm351_vm9, %v378_v60, -inf }
 0x2de   :  { %v380_v49 = vpop.f32.mrf.mxu1 }
 0x2df   :  { %v381_v50 = vadd.f32 %v380_v49, %v2210_v48 }
 0x2e1   :  { %v386_v51 = vsel %vm351_vm9, %v381_v50, -inf }
 0x2e2   :  { %387 = vmax.xlane.f32.xlu2 %v386_v51 }
 0x2f0   :  { %v473_v53 = vpop.f32.mrf.mxu3 }
 0x2f1   :  { %v474_v54 = vadd.f32 %v473_v53, %v2215_v52 }
 0x2f3   :  { %v479_v55 = vsel %vm351_vm9, %v474_v54, -inf }
 0x2f4   :  { %480 = vmax.xlane.f32.xlu0 %v479_v55 }
 0x2f8   :  { %v476_v56 = vpop.f32.mrf.mxu3 }
 0x2f9   :  { %v477_v57 = vadd.f32 %v476_v56, %v2210_v48 }
 0x2fb   :  { %v482_v59 = vsel %vm351_vm9, %v477_v57, -inf }
 0x2fc   :  { %483 = vmax.xlane.f32.xlu1 %v482_v59 }
 0x304   :  { %384 = vmax.xlane.f32.xlu1 %v383_v61 }
 0x308   :  { %1712 = vrot.lane.b32.xlu0 %v1711_v62, %s1911_s21 }
 0x355   :  { %v388_v63 = vpop.xlane.xlu2 %387 }
 0x356   :  { %v390_v2 = vsub.f32 %v381_v50, %v388_v63 }
 0x358   :  { %v393_v4 = vmul.f32 1.442695, %v390_v2 }
 0x367   :  { %v481_v0 = vpop.xlane.xlu0 %480 }
 0x368   :  { %v485_v1 = vsub.f32 %v474_v54, %v481_v0  ;;  %v1744_v54 = vld [vmem:[%s1969_s14] ss:$0 sm:$0xff]  ;;  %s2407_s14 = sld [smem:[#allocation13_spill]] }
 0x36a   :  { %v487_v3 = vmul.f32 1.442695, %v485_v1 }
 0x36c   :  { %1766 = vpow2.f32 %v487_v3 }
 0x36d   :  { %1768 = vpow2.f32 %v393_v4 }
 0x36f   :  { %v484_v5 = vpop.xlane.xlu1 %483 }
 0x370   :  { %v486_v6 = vsub.f32 %v477_v57, %v484_v5 }
 0x372   :  { %v1767_v7 = vpop.eup %1766  ;;  %v489_v8 = vmul.f32 1.442695, %v486_v6 }
 0x373   :  { %v491_v9 = vsel %vm351_vm9, %v1767_v7, 0.0  ;;  %v1769_v11 = vpop.eup %1768 }
 0x374   :  { %1770 = vpow2.f32 %v489_v8  ;;  %492 = vadd.xlane.f32.xlu2 %v491_v9  ;;  %v398_v17 = vsel %vm351_vm9, %v1769_v11, 0.0 }
 0x377   :  { %v385_v10 = vpop.xlane.xlu1 %384 }
 0x378   :  { %v389_v12 = vsub.f32 %v378_v60, %v385_v10  ;;  %v1649_v10 = vld [vmem:[%s1984_s30] sm:$0xff] }
 0x37a   :  { %v1771_v13 = vpop.eup %1770  ;;  %v391_v14 = vmul.f32 1.442695, %v389_v12  ;;  %v1713_v15 = vpop.permute.xlu0 %1712 }
 0x37b   :  { %v494_v16 = vsel %vm351_vm9, %v1771_v13, 0.0  ;;  %v1714_v18 = vunpack.i.l.bf16 %v1713_v15  ;;  %v1715_v19 = vunpack.i.h.bf16 %v1713_v15 }
 0x37c   :  { %1772 = vpow2.f32 %v391_v14  ;;  %495 = vadd.xlane.f32.xlu1 %v494_v16  ;;  %399 = vadd.xlane.f32.xlu2 %v398_v17 }
 0x37d   :  { %431 = vmatpush.msrb.mxu0 %v1714_v18  ;;  %1667 = vmatpush.msra.mxu2 %v1714_v18 }
 0x37f   :  { %432 = vmatpush.msrb.mxu0 %v1715_v19  ;;  %1668 = vmatpush.msra.mxu2 %v1715_v19 }
 0x381   :  { %576 = vmatpush.bf16.msra.mxu0 %v1648_v39 }
 0x382   :  { %v1773_v20 = vpop.eup %1772 }
 0x383   :  { %v395_v21 = vsel %vm351_vm9, %v1773_v20, 0.0 }
 0x384   :  { %396 = vadd.xlane.f32.xlu0 %v395_v21 }
 0x385   :  { %577 = vmatpush.bf16.msra.mxu0 %v1647_v44 }
 0x394   :  { %1717 = vrot.lane.b32.xlu2 %v1711_v62, %s1912_s25 }
 0x3e7   :  { %v493_v22 = vpop.xlane.xlu2 %492 }
 0x3ef   :  { %v400_v23 = vpop.xlane.xlu2 %399  ;;  %v496_v30 = vpop.xlane.xlu1 %495 }
 0x3f0   :  { %1774 = vrcp.f32 %v400_v23 }
 0x3f1   :  { %1776 = vrcp.f32 %v493_v22 }
 0x3f6   :  { %v1775_v24 = vpop.eup %1774 }
 0x3f7   :  { %v397_v25 = vpop.xlane.xlu0 %396  ;;  %v1718_v26 = vpop.permute.xlu2 %1717  ;;  %v404_v27 = vmul.f32 %v1775_v24, %v1769_v11 }
 0x3f8   :  { %1778 = vrcp.f32 %v397_v25  ;;  %v1719_v28 = vunpack.i.l.bf16 %v1718_v26  ;;  %v1720_v29 = vunpack.i.h.bf16 %v1718_v26  ;;  %v1777_v31 = vpop.eup %1776 }
 0x3f9   :  { %1537 = vmatmul.msk.f32.vlgmr.msra.gmra.mxu2 %vm351_vm9, %v404_v27  ;;  %1780 = vrcp.f32 %v496_v30  ;;  %v499_v36 = vmul.f32 %v1777_v31, %v1767_v7 }
 0x3fa   :  { %527 = vmatpush.msrb.mxu2 %v1719_v28 }
 0x3fc   :  { %528 = vmatpush.msrb.mxu2 %v1720_v29  ;;  %v1745_v29 = vld [vmem:[%s1974_s19] ss:$0 sm:$0xff]  ;;  %s2408_s19 = sld [smem:[#allocation11_spill]] }
 0x3fe   :  { %v1779_v32 = vpop.eup %1778 }
 0x3ff   :  { %v403_v35 = vmul.f32 %v1779_v32, %v1773_v20  ;;  %v1781_v37 = vpop.eup %1780 }
 0x400   :  { %v500_v38 = vmul.f32 %v1781_v37, %v1771_v13 }
 0x401   :  { %1536 = vmatmul.msk.f32.vlgmr.msrb.gmra.mxu0 %vm351_vm9, %v403_v35  ;;  %1542 = vmatmul.msk.f32.vlgmr.msrb.gmra.mxu2 %vm351_vm9, %v499_v36  ;;  %v1746_v36 = vld [vmem:[%s1979_s24] ss:$0 sm:$0xff]  ;;  %s2409_s24 = sld [smem:[#allocation12_spill]] }
 0x409   :  { %1543 = vmatmul.msk.f32.gmra.mxu2 %vm351_vm9, %v500_v38 }
 0x47c   :  { %v437_v40 = vpop.f32.mrf.mxu2 }
 0x47e   :  { %v434_v49 = vpop.f32.mrf.mxu0 }
 0x484   :  { %v530_v41 = vpop.f32.mrf.mxu2 }
 0x48c   :  { %v533_v42 = vpop.f32.mrf.mxu2 }
 0x48d   :  { %v1721_v43 = vpack.i.bf16 %v533_v42, %v530_v41  ;;  %v1747_v41 = vld [vmem:[%s1989_s6] ss:$0 sm:$0xff]  ;;  %s2411_s6 = sld [smem:[#allocation15_spill]] }
 0x48f   :  { %1722 = vrot.lane.b32.xlu1 %v1721_v43, %s1913_s29 }
 0x501   :  { %v1723_v45 = vpop.permute.xlu1 %1722 }
 0x502   :  { %v1725_v46 = vunpack.i.h.bf16 %v1723_v45  ;;  %v1724_v47 = vunpack.i.l.bf16 %v1723_v45 }
 0x504   :  { %v545_v50 = vsel %vm351_vm9, %v437_v40, %v1725_v46  ;;  %v544_v51 = vsel %vm351_vm9, %v434_v49, %v1724_v47  ;;  %v1654_v47 = vld [vmem:[%s2405_s3 + $0x18] sm:$0xff] }
 0x505   :  { %v546_v53 = vpack.c.bf16 %v545_v50, %v544_v51  ;;  %777 = vmatpush.bf16.msrb.mxu3 %v1654_v47 }
 0x507   :  { %1552 = vmatmul.msk.bf16.vlgmr.msra.gmra.mxu0 %vm243_vm1, %v546_v53 }
 0x584   :  { %v579_v55 = vpop.f32.mrf.mxu0 }
 0x585   :  { %v580_v56 = vadd.f32 %v1744_v54, %v579_v55 }
 0x587   :  { %v584_v57 = vadd.f32 %v580_v56, %v2187_v33 }
 0x589   :  { %v588_v59 = vsel %vm243_vm1, %v584_v57, 0.0 }
 0x58a   :  { %589 = vadd.xlane.f32.xlu2 %v588_v59 }
 0x58c   :  { %v581_v60 = vpop.f32.mrf.mxu0 }
 0x58d   :  { %v582_v61 = vadd.f32 %v1744_v54, %v581_v60  ;;  %v1653_v54 = vld [vmem:[%s2405_s3 + $0x10] sm:$0xff] }
 0x58e   :  { %778 = vmatpush.bf16.msrb.mxu3 %v1653_v54 }
 0x58f   :  { %v585_v62 = vadd.f32 %v582_v61, %v2189_v34  ;;  %v1650_v34 = vld [vmem:[%s1984_s30 + $0x8] sm:$0xff]  ;;  %s2410_s30 = sld [smem:[#allocation14_spill]] }
 0x590   :  { %672 = vmatpush.bf16.msrb.mxu1 %v1650_v34 }
 0x591   :  { %v591_v63 = vsel %vm243_vm1, %v585_v62, 0.0 }
 0x592   :  { %592 = vadd.xlane.f32.xlu1 %v591_v63  ;;  %v1651_v63 = vld [vmem:[%s2405_s3] sm:$0xff] }
 0x594   :  { %673 = vmatpush.bf16.msrb.mxu1 %v1649_v10 }
 0x5fd   :  { %v590_v0 = vpop.xlane.xlu2 %589 }
 0x5fe   :  { %v594_v1 = vmul.f32 %v590_v0, %v2175_v58 }
 0x600   :  { %v596_v2 = vsub.f32 %v584_v57, %v594_v1  ;;  %v1652_v57 = vld [vmem:[%s2405_s3 + $0x8] sm:$0xff] }
 0x601   :  { %779 = vmatpush.bf16.msrb.mxu3 %v1652_v57 }
 0x602   :  { %v598_v3 = vmul.f32 %v596_v2, %v596_v2 }
 0x604   :  { %v600_v4 = vsel %vm243_vm1, %v598_v3, 0.0 }
 0x605   :  { %v593_v33 = vpop.xlane.xlu1 %592  ;;  %601 = vadd.xlane.f32.xlu0 %v600_v4  ;;  %780 = vmatpush.bf16.msrb.mxu3 %v1651_v63 }
 0x606   :  { %v595_v5 = vmul.f32 %v593_v33, %v2175_v58 }
 0x608   :  { %v597_v6 = vsub.f32 %v585_v62, %v595_v5 }
 0x60a   :  { %v599_v7 = vmul.f32 %v597_v6, %v597_v6 }
 0x60c   :  { %v603_v8 = vsel %vm243_vm1, %v599_v7, 0.0 }
 0x60d   :  { %604 = vadd.xlane.f32.xlu0 %v603_v8 }
 0x678   :  { %v602_v9 = vpop.xlane.xlu0 %601 }
 0x679   :  { %v606_v11 = vmul.f32 %v602_v9, %v2175_v58 }
 0x67b   :  { %v608_v12 = vadd.f32 1e-12, %v606_v11 }
 0x67d   :  { %1782 = vrsqrt.f32 %v608_v12  ;;  %vm616_vm11 = vweird.f32 %v608_v12 }
 0x680   :  { %v605_v13 = vpop.xlane.xlu0 %604 }
 0x681   :  { %v607_v14 = vmul.f32 %v605_v13, %v2175_v58 }
 0x683   :  { %v1783_v15 = vpop.eup %1782  ;;  %v609_v16 = vadd.f32 1e-12, %v607_v14 }
 0x684   :  { %v611_v17 = vmul.f32 %v1783_v15, %v608_v12  ;;  %vm617_vm10 = vweird.f32 %v1783_v15 }
 0x685   :  { %1784 = vrsqrt.f32 %v609_v16  ;;  %vm618_vm12 = vmor %vm616_vm11, %vm617_vm10  ;;  %vm626_vm14 = vweird.f32 %v609_v16 }
 0x686   :  { %v612_v18 = vmul.f32 %v1783_v15, %v611_v17 }
 0x688   :  { %v613_v19 = vmul.f32 0.5, %v612_v18 }
 0x68a   :  { %v614_v20 = vsub.f32 1.5, %v613_v19 }
 0x68b   :  { %v1785_v21 = vpop.eup %1784 }
 0x68c   :  { %v615_v22 = vmul.f32 %v1783_v15, %v614_v20  ;;  %v621_v23 = vmul.f32 %v1785_v21, %v609_v16  ;;  %vm627_vm13 = vweird.f32 %v1785_v21 }
 0x68d   :  { %vm628_vm15 = vmor %vm626_vm14, %vm627_vm13 }
 0x68e   :  { %v622_v24 = vmul.f32 %v1785_v21, %v621_v23  ;;  %v619_v25 = vsel %vm618_vm12, %v1783_v15, %v615_v22 }
 0x68f   :  { %v630_v28 = vmul.f32 %v619_v25, %v596_v2  ;;  %v1914_v25 = vmov 1.0  }
 0x690   :  { %v623_v26 = vmul.f32 0.5, %v622_v24 }
 0x691   :  { %v635_v35 = vmul.f32 %v1745_v29, %v630_v28 }
 0x692   :  { %v624_v27 = vsub.f32 1.5, %v623_v26 }
 0x693   :  { %v2254_v38 = vadd.f32 %v1746_v36, %v635_v35 }
 0x694   :  { %v625_v30 = vmul.f32 %v1785_v21, %v624_v27 }
 0x696   :  { %v629_v31 = vsel %vm628_vm15, %v1785_v21, %v625_v30 }
 0x697   :  { %v631_v32 = vmul.f32 %v629_v31, %v597_v6 }
 0x699   :  { %v636_v37 = vmul.f32 %v1745_v29, %v631_v32 }
 0x69b   :  { %v2256_v39 = vadd.f32 %v1746_v36, %v636_v37 }
 0x69d   :  { %v642_v40 = vpack.c.bf16 %v2256_v39, %v2254_v38 }
 0x69f   :  { %1561 = vmatmul.msk.bf16.vlgmr.msrb.gmra.mxu1 %vm243_vm1, %v642_v40 }
 0x71c   :  { %v675_v42 = vpop.f32.mrf.mxu1 }
 0x71d   :  { %v2262_v43 = vadd.f32 %v1747_v41, %v675_v42 }
 0x71f   :  { %v682_v44 = vmul.f32 0.70710677, %v2262_v43  ;;  %v680_v35 = vmul.f32 0.5, %v2262_v43 }
 0x721   :  { %v688_v45 = vand.u32 2147483647, %v682_v44  ;;  %vm684_vm0 = vcmp.lt.f32.partialorder %v682_v44, 0.0  ;;  %v1748_v44 = vld [vmem:[%s2406_s8] ss:$0 sm:$0xff] }
 0x722   :  { %v686_v26 = vsel %vm684_vm0, -1.0, %v1914_v25 }
 0x723   :  { %v690_v46 = vmul.f32 0.3275911, %v688_v45  ;;  %v714_v60 = vsub.f32 0.0, %v688_v45 }
 0x724   :  { %v677_v49 = vpop.f32.mrf.mxu1 }
 0x725   :  { %v692_v50 = vadd.f32 1.0, %v690_v46  ;;  %v678_v51 = vadd.f32 %v1747_v41, %v677_v49  ;;  %v716_v1 = vmul.f32 %v714_v60, %v688_v45 }
 0x727   :  { %1786 = vrcp.f32 %v692_v50  ;;  %v683_v53 = vmul.f32 0.70710677, %v678_v51  ;;  %v718_v33 = vmul.f32 1.442695, %v716_v1  ;;  %v681_v36 = vmul.f32 0.5, %v678_v51 }
 0x729   :  { %v689_v55 = vand.u32 2147483647, %v683_v53  ;;  %vm685_vm2 = vcmp.lt.f32.partialorder %v683_v53, 0.0 }
 0x72a   :  { %v687_v30 = vsel %vm685_vm2, -1.0, %v1914_v25 }
 0x72b   :  { %v691_v56 = vmul.f32 0.3275911, %v689_v55  ;;  %v715_v5 = vsub.f32 0.0, %v689_v55 }
 0x72d   :  { %v1787_v59 = vpop.eup %1786  ;;  %v693_v61 = vadd.f32 1.0, %v691_v56  ;;  %v717_v9 = vmul.f32 %v715_v5, %v689_v55 }
 0x72e   :  { %v696_v62 = vmul.f32 1.0614054, %v1787_v59 }
 0x72f   :  { %1788 = vrcp.f32 %v693_v61  ;;  %v720_v14 = vmul.f32 1.442695, %v717_v9 }
 0x730   :  { %v698_v0 = vadd.f32 -1.4531521, %v696_v62  ;;  %1790 = vpow2.f32 %v718_v33 }
 0x731   :  { %1792 = vpow2.f32 %v720_v14 }
 0x732   :  { %v700_v2 = vmul.f32 %v1787_v59, %v698_v0 }
 0x734   :  { %v702_v3 = vadd.f32 1.4214138, %v700_v2  ;;  %v1655_v2 = vld [vmem:[%s2407_s14] sm:$0xff] }
 0x735   :  { %v1789_v4 = vpop.eup %1788 }
 0x736   :  { %v704_v6 = vmul.f32 %v1787_v59, %v702_v3  ;;  %v697_v7 = vmul.f32 1.0614054, %v1789_v4  ;;  %v1791_v17 = vpop.eup %1790 }
 0x737   :  { %v1793_v24 = vpop.eup %1792 }
 0x738   :  { %v706_v8 = vadd.f32 -0.28449672, %v704_v6  ;;  %v699_v34 = vadd.f32 -1.4531521, %v697_v7 }
 0x73a   :  { %v708_v10 = vmul.f32 %v1787_v59, %v706_v8  ;;  %v701_v11 = vmul.f32 %v1789_v4, %v699_v34 }
 0x73c   :  { %v710_v12 = vadd.f32 0.2548296, %v708_v10  ;;  %v703_v13 = vadd.f32 1.4214138, %v701_v11 }
 0x73e   :  { %v712_v15 = vmul.f32 %v1787_v59, %v710_v12  ;;  %v705_v16 = vmul.f32 %v1789_v4, %v703_v13 }
 0x740   :  { %v722_v18 = vmul.f32 %v1791_v17, %v712_v15  ;;  %v707_v19 = vadd.f32 -0.28449672, %v705_v16  ;;  %v1749_v17 = vld [vmem:[%s2408_s19] ss:$0 sm:$0xff] }
 0x742   :  { %v709_v20 = vmul.f32 %v1789_v4, %v707_v19  ;;  %v724_v21 = vsub.f32 1.0, %v722_v18 }
 0x744   :  { %v711_v22 = vadd.f32 0.2548296, %v709_v20  ;;  %v726_v27 = vmul.f32 %v724_v21, %v686_v26  ;;  %v1750_v21 = vld [vmem:[%s2409_s24] ss:$0 sm:$0xff] }
 0x746   :  { %v713_v23 = vmul.f32 %v1789_v4, %v711_v22  ;;  %v728_v31 = vadd.f32 1.0, %v726_v27 }
 0x748   :  { %v723_v28 = vmul.f32 %v1793_v24, %v713_v23  ;;  %v730_v40 = vmul.f32 %v728_v31, %v680_v35 }
 0x74a   :  { %v725_v29 = vsub.f32 1.0, %v723_v28 }
 0x74c   :  { %v727_v32 = vmul.f32 %v725_v29, %v687_v30  ;;  %v1751_v29 = vld [vmem:[%s2410_s30] ss:$0 sm:$0xff] }
 0x74e   :  { %v729_v37 = vadd.f32 1.0, %v727_v32 }
 0x750   :  { %v731_v41 = vmul.f32 %v729_v37, %v681_v36 }
 0x752   :  { %v732_v42 = vpack.c.bf16 %v731_v41, %v730_v40 }
 0x754   :  { %1578 = vmatmul.msk.bf16.vlgmr.msrb.gmra.mxu3 %vm769_vm3, %v732_v42 }
 0x7d7   :  { %v782_v45 = vpop.f32.mrf.mxu3 }
 0x7d8   :  { %v783_v46 = vadd.f32 %v1748_v44, %v782_v45 }
 0x7da   :  { %v787_v47 = vadd.f32 %v783_v46, %v2254_v38 }
 0x7dc   :  { %v791_v49 = vsel %vm243_vm1, %v787_v47, 0.0 }
 0x7dd   :  { %792 = vadd.xlane.f32.xlu2 %v791_v49 }
 0x7df   :  { %v784_v50 = vpop.f32.mrf.mxu3 }
 0x7e0   :  { %v785_v53 = vadd.f32 %v1748_v44, %v784_v50 }
 0x7e2   :  { %v788_v43 = vadd.f32 %v785_v53, %v2256_v39  ;;  %v1656_v39 = vld [vmem:[%s2407_s14 + $0x8] sm:$0xff] }
 0x7e3   :  { %875 = vmatpush.bf16.msra.mxu2 %v1656_v39 }
 0x7e4   :  { %v794_v51 = vsel %vm243_vm1, %v788_v43, 0.0 }
 0x7e5   :  { %795 = vadd.xlane.f32.xlu0 %v794_v51 }
 0x7e7   :  { %876 = vmatpush.bf16.msra.mxu2 %v1655_v2 }
 0x850   :  { %v793_v54 = vpop.xlane.xlu2 %792 }
 0x851   :  { %v797_v55 = vmul.f32 %v793_v54, %v2175_v58 }
 0x853   :  { %v799_v56 = vsub.f32 %v787_v47, %v797_v55 }
 0x855   :  { %v801_v57 = vmul.f32 %v799_v56, %v799_v56 }
 0x857   :  { %v803_v59 = vsel %vm243_vm1, %v801_v57, 0.0 }
 0x858   :  { %v796_v38 = vpop.xlane.xlu0 %795  ;;  %804 = vadd.xlane.f32.xlu2 %v803_v59 }
 0x859   :  { %v798_v60 = vmul.f32 %v796_v38, %v2175_v58 }
 0x85b   :  { %v800_v61 = vsub.f32 %v788_v43, %v798_v60 }
 0x85d   :  { %v802_v62 = vmul.f32 %v800_v61, %v800_v61 }
 0x85f   :  { %v806_v63 = vsel %vm243_vm1, %v802_v62, 0.0 }
 0x860   :  { %807 = vadd.xlane.f32.xlu0 %v806_v63 }
 0x8cb   :  { %v805_v0 = vpop.xlane.xlu2 %804 }
 0x8cc   :  { %v809_v1 = vmul.f32 %v805_v0, %v2175_v58 }
 0x8ce   :  { %v811_v3 = vadd.f32 1e-12, %v809_v1 }
 0x8d0   :  { %1794 = vrsqrt.f32 %v811_v3  ;;  %vm819_vm5 = vweird.f32 %v811_v3 }
 0x8d3   :  { %v808_v4 = vpop.xlane.xlu0 %807 }
 0x8d4   :  { %v810_v33 = vmul.f32 %v808_v4, %v2175_v58 }
 0x8d6   :  { %v1795_v5 = vpop.eup %1794  ;;  %v812_v6 = vadd.f32 1e-12, %v810_v33 }
 0x8d7   :  { %v814_v7 = vmul.f32 %v1795_v5, %v811_v3  ;;  %vm820_vm4 = vweird.f32 %v1795_v5 }
 0x8d8   :  { %1796 = vrsqrt.f32 %v812_v6  ;;  %vm821_vm6 = vmor %vm819_vm5, %vm820_vm4  ;;  %vm829_vm8 = vweird.f32 %v812_v6 }
 0x8d9   :  { %v815_v8 = vmul.f32 %v1795_v5, %v814_v7 }
 0x8db   :  { %v816_v34 = vmul.f32 0.5, %v815_v8 }
 0x8dd   :  { %v817_v9 = vsub.f32 1.5, %v816_v34 }
 0x8de   :  { %v1797_v10 = vpop.eup %1796 }
 0x8df   :  { %v818_v11 = vmul.f32 %v1795_v5, %v817_v9  ;;  %v824_v12 = vmul.f32 %v1797_v10, %v812_v6  ;;  %vm830_vm7 = vweird.f32 %v1797_v10 }
 0x8e0   :  { %vm831_vm10 = vmor %vm829_vm8, %vm830_vm7 }
 0x8e1   :  { %v825_v13 = vmul.f32 %v1797_v10, %v824_v12  ;;  %v822_v14 = vsel %vm821_vm6, %v1795_v5, %v818_v11 }
 0x8e2   :  { %v833_v18 = vmul.f32 %v822_v14, %v799_v56 }
 0x8e3   :  { %v826_v15 = vmul.f32 0.5, %v825_v13 }
 0x8e4   :  { %v838_v22 = vmul.f32 %v1749_v17, %v833_v18 }
 0x8e5   :  { %v827_v16 = vsub.f32 1.5, %v826_v15 }
 0x8e6   :  { %v2288_v26 = vadd.f32 %v1750_v21, %v838_v22 }
 0x8e7   :  { %v828_v19 = vmul.f32 %v1797_v10, %v827_v16 }
 0x8e9   :  { %v832_v20 = vsel %vm831_vm10, %v1797_v10, %v828_v19  ;;  %vm1384_vm10 = vcmask 1040384  }
 0x8ea   :  { %v834_v23 = vmul.f32 %v832_v20, %v800_v61 }
 0x8ec   :  { %v839_v24 = vmul.f32 %v1749_v17, %v834_v23 }
 0x8ee   :  { %v2290_v27 = vadd.f32 %v1750_v21, %v839_v24 }
 0x8f0   :  { %v845_v28 = vpack.c.bf16 %v2290_v27, %v2288_v26 }
 0x8f2   :  { %1587 = vmatmul.msk.bf16.vlgmr.msra.gmra.mxu2 %vm243_vm1, %v845_v28 }
 0x975   :  { %v878_v30 = vpop.f32.mrf.mxu2 }
 0x976   :  { %v879_v31 = vadd.f32 %v1751_v29, %v878_v30 }
 0x978   :  { %977 = vrot.lane.b32.xlu0 %v879_v31, %s1910_s17  ;;  %981 = vrot.lane.b32.xlu2 %v879_v31, %s1908_s9 }
 0x97d   :  { %v880_v32 = vpop.f32.mrf.mxu2 }
 0x97e   :  { %v881_v35 = vadd.f32 %v1751_v29, %v880_v32 }
 0x980   :  { %983 = vrot.lane.b32.xlu1 %v881_v35, %s1908_s9  ;;  %887 = vrot.lane.b32.xlu0 %v881_v35, %s1909_s13  ;;  %v1726_v59 = vpack.i.bf16 %v879_v31, %v881_v35 }
 0x981   :  { %885 = vrot.lane.b32.xlu2 %v879_v31, %s1909_s13 }
 0x988   :  { %979 = vrot.lane.b32.xlu1 %v881_v35, %s1910_s17 }
 0x9d2   :  { %v982_v37 = vpop.permute.xlu2 %981 }
 0x9db   :  { %v886_v42 = vpop.permute.xlu2 %885 }
 0x9ea   :  { %v978_v36 = vpop.permute.xlu0 %977 }
 0x9f2   :  { %v984_v40 = vpop.permute.xlu1 %983  ;;  %v888_v41 = vpop.permute.xlu0 %887 }
 0x9f3   :  { %1588 = vmatpush.xpose.msk.msrb.mxu0 %vm351_vm9, %v888_v41  ;;  %1594 = vmatpush.xpose.msk.msra.mxu3 %vm351_vm9, %v984_v40 }
 0x9f7   :  { %1589 = vmatpush.xpose.msk.msrb.mxu0 %vm351_vm9, %v886_v42  ;;  %1595 = vmatpush.xpose.msk.msra.mxu3 %vm351_vm9, %v982_v37  ;;  %v1657_v37 = vld [vmem:[%s2411_s6] sm:$0xff] }
 0x9fa   :  { %1590 = vmatmul.msk.f32.vlgmr.msrb.gmra.mxu0 %vm351_vm9, %v879_v31  ;;  %1596 = vmatmul.msk.f32.vlgmr.msra.gmra.mxu3 %vm351_vm9, %v978_v36  ;;  %v980_v44 = vpop.permute.xlu1 %979  ;;  %v1658_v31 = vld [vmem:[%s2411_s6 + $0x8] sm:$0xff] }
 0x9fb   :  { %1113 = vmatpush.bf16.msra.mxu0 %v1658_v31 }
 0x9ff   :  { %1114 = vmatpush.bf16.msra.mxu0 %v1657_v37 }
 0xa02   :  { %1591 = vmatmul.msk.f32.gmra.mxu0 %vm351_vm9, %v881_v35  ;;  %1597 = vmatmul.msk.f32.gmra.mxu3 %vm351_vm9, %v980_v44 }
 0xa77   :  { %v914_v45 = vpop.f32.mrf.mxu0 }
 0xa78   :  { %v915_v46 = vadd.f32 %v914_v45, %v2215_v52 }
 0xa7a   :  { %v920_v47 = vsel %vm351_vm9, %v915_v46, -inf }
 0xa7b   :  { %921 = vmax.xlane.f32.xlu2 %v920_v47 }
 0xa7d   :  { %v1010_v49 = vpop.f32.mrf.mxu3 }
 0xa7e   :  { %v1011_v50 = vadd.f32 %v1010_v49, %v2215_v52 }
 0xa7f   :  { %v917_v55 = vpop.f32.mrf.mxu0 }
 0xa80   :  { %v1016_v53 = vsel %vm351_vm9, %v1011_v50, -inf  ;;  %v918_v56 = vadd.f32 %v917_v55, %v2210_v48 }
 0xa81   :  { %1017 = vmax.xlane.f32.xlu1 %v1016_v53 }
 0xa82   :  { %v923_v57 = vsel %vm351_vm9, %v918_v56, -inf }
 0xa85   :  { %v1013_v43 = vpop.f32.mrf.mxu3 }
 0xa86   :  { %v1014_v51 = vadd.f32 %v1013_v43, %v2210_v48 }
 0xa88   :  { %v1019_v54 = vsel %vm351_vm9, %v1014_v51, -inf }
 0xa89   :  { %1020 = vmax.xlane.f32.xlu0 %v1019_v54 }
 0xa91   :  { %924 = vmax.xlane.f32.xlu0 %v923_v57 }
 0xa93   :  { %1727 = vrot.lane.b32.xlu2 %v1726_v59, %s1912_s25 }
 0xaee   :  { %v922_v38 = vpop.xlane.xlu2 %921 }
 0xaef   :  { %v926_v52 = vsub.f32 %v915_v46, %v922_v38 }
 0xaf1   :  { %v928_v60 = vmul.f32 1.442695, %v926_v52 }
 0xaf3   :  { %1798 = vpow2.f32 %v928_v60 }
 0xaf4   :  { %v1018_v61 = vpop.xlane.xlu1 %1017 }
 0xaf5   :  { %v1022_v62 = vsub.f32 %v1011_v50, %v1018_v61  ;;  %v1752_v50 = vld [vmem:[%s2412_s4] ss:$0 sm:$0xff] }
 0xaf6   :  { %v1728_v63 = vpop.permute.xlu2 %1727 }
 0xaf7   :  { %v1024_v39 = vmul.f32 1.442695, %v1022_v62  ;;  %v1729_v0 = vunpack.i.l.bf16 %v1728_v63  ;;  %v1730_v2 = vunpack.i.h.bf16 %v1728_v63 }
 0xaf9   :  { %v1799_v1 = vpop.eup %1798  ;;  %1800 = vpow2.f32 %v1024_v39  ;;  %1064 = vmatpush.msrb.mxu2 %v1729_v0 }
 0xafa   :  { %v932_v48 = vsel %vm351_vm9, %v1799_v1, 0.0 }
 0xafb   :  { %933 = vadd.xlane.f32.xlu0 %v932_v48  ;;  %1065 = vmatpush.msrb.mxu2 %v1730_v2 }
 0xafc   :  { %v1021_v3 = vpop.xlane.xlu0 %1020 }
 0xafd   :  { %v1023_v4 = vsub.f32 %v1014_v51, %v1021_v3 }
 0xaff   :  { %v1801_v33 = vpop.eup %1800  ;;  %v1026_v5 = vmul.f32 1.442695, %v1023_v4  ;;  %v1659_v4 = vld [vmem:[%s2413_s15] sm:$0xff] }
 0xb00   :  { %v1028_v6 = vsel %vm351_vm9, %v1801_v33, 0.0 }
 0xb01   :  { %1802 = vpow2.f32 %v1026_v5  ;;  %1029 = vadd.xlane.f32.xlu1 %v1028_v6 }
 0xb04   :  { %v925_v7 = vpop.xlane.xlu0 %924 }
 0xb05   :  { %v927_v8 = vsub.f32 %v918_v56, %v925_v7 }
 0xb07   :  { %v1803_v34 = vpop.eup %1802  ;;  %v930_v9 = vmul.f32 1.442695, %v927_v8 }
 0xb08   :  { %v1031_v10 = vsel %vm351_vm9, %v1803_v34, 0.0 }
 0xb09   :  { %1804 = vpow2.f32 %v930_v9  ;;  %1032 = vadd.xlane.f32.xlu1 %v1031_v10 }
 0xb0f   :  { %v1805_v11 = vpop.eup %1804 }
 0xb10   :  { %v935_v12 = vsel %vm351_vm9, %v1805_v11, 0.0 }
 0xb11   :  { %936 = vadd.xlane.f32.xlu0 %v935_v12 }
 0xb22   :  { %1732 = vrot.lane.b32.xlu1 %v1726_v59, %s1911_s21 }
 0xb6e   :  { %v934_v19 = vpop.xlane.xlu0 %933 }
 0xb74   :  { %v1030_v13 = vpop.xlane.xlu1 %1029 }
 0xb75   :  { %1806 = vrcp.f32 %v1030_v13 }
 0xb7b   :  { %v1807_v14 = vpop.eup %1806 }
 0xb7c   :  { %v1036_v15 = vmul.f32 %v1807_v14, %v1801_v33  ;;  %v1033_v16 = vpop.xlane.xlu1 %1032 }
 0xb7d   :  { %1808 = vrcp.f32 %v1033_v16 }
 0xb7e   :  { %1598 = vmatmul.msk.f32.vlgmr.msrb.gmra.mxu2 %vm351_vm9, %v1036_v15  ;;  %1810 = vrcp.f32 %v934_v19 }
 0xb83   :  { %v1809_v17 = vpop.eup %1808 }
 0xb84   :  { %v1037_v18 = vmul.f32 %v1809_v17, %v1803_v34  ;;  %v937_v20 = vpop.xlane.xlu0 %936  ;;  %v1811_v22 = vpop.eup %1810 }
 0xb85   :  { %1812 = vrcp.f32 %v937_v20  ;;  %v940_v28 = vmul.f32 %v1811_v22, %v1799_v1  ;;  %v1754_v22 = vld [vmem:[%s2415_s22] ss:$0 sm:$0xff] }
 0xb86   :  { %1599 = vmatmul.msk.f32.gmra.mxu2 %vm351_vm9, %v1037_v18  ;;  %v1753_v18 = vld [vmem:[%s2414_s11] ss:$0 sm:$0xff] }
 0xb8b   :  { %v1813_v29 = vpop.eup %1812 }
 0xb8c   :  { %v941_v30 = vmul.f32 %v1813_v29, %v1805_v11 }
 0xb94   :  { %v1733_v21 = vpop.permute.xlu1 %1732 }
 0xb95   :  { %v1734_v23 = vunpack.i.l.bf16 %v1733_v21  ;;  %v1735_v24 = vunpack.i.h.bf16 %v1733_v21 }
 0xb97   :  { %968 = vmatpush.msra.mxu1 %v1734_v23 }
 0xb99   :  { %969 = vmatpush.msra.mxu1 %v1735_v24 }
 0xb9a   :  { %1592 = vmatmul.msk.f32.vlgmr.msra.gmra.mxu1 %vm351_vm9, %v940_v28 }
 0xba2   :  { %1593 = vmatmul.msk.f32.gmra.mxu1 %vm351_vm9, %v941_v30 }
 0xc01   :  { %v1067_v32 = vpop.f32.mrf.mxu2 }
 0xc09   :  { %v1070_v35 = vpop.f32.mrf.mxu2 }
 0xc0a   :  { %v1736_v36 = vpack.i.bf16 %v1070_v35, %v1067_v32  ;;  %v1755_v32 = vld [vmem:[%s2416_s18] ss:$0 sm:$0xff] }
 0xc0c   :  { %1737 = vrot.lane.b32.xlu0 %v1736_v36, %s1913_s29 }
 0xc17   :  { %v971_v40 = vpop.f32.mrf.mxu1 }
 0xc1f   :  { %v974_v45 = vpop.f32.mrf.mxu1 }
 0xc7e   :  { %v1738_v41 = vpop.permute.xlu0 %1737 }
 0xc7f   :  { %v1740_v42 = vunpack.i.h.bf16 %v1738_v41  ;;  %v1739_v44 = vunpack.i.l.bf16 %v1738_v41 }
 0xc81   :  { %v1082_v46 = vsel %vm351_vm9, %v974_v45, %v1740_v42  ;;  %v1081_v47 = vsel %vm351_vm9, %v971_v40, %v1739_v44  ;;  %v1664_v44 = vld [vmem:[%s2417_s28 + $0x18] sm:$0xff] }
 0xc82   :  { %v1083_v49 = vpack.c.bf16 %v1082_v46, %v1081_v47  ;;  %1313 = vmatpush.bf16.msrb.mxu3 %v1664_v44 }
 0xc84   :  { %1608 = vmatmul.msk.bf16.vlgmr.msra.gmra.mxu0 %vm243_vm1, %v1083_v49  ;;  %v1663_v49 = vld [vmem:[%s2417_s28 + $0x10] sm:$0xff] }
 0xc86   :  { %1314 = vmatpush.bf16.msrb.mxu3 %v1663_v49 }
 0xd01   :  { %v1116_v53 = vpop.f32.mrf.mxu0 }
 0xd02   :  { %v1117_v43 = vadd.f32 %v1752_v50, %v1116_v53 }
 0xd04   :  { %v1121_v51 = vadd.f32 %v1117_v43, %v2288_v26  ;;  %v1662_v43 = vld [vmem:[%s2417_s28 + $0x8] sm:$0xff] }
 0xd05   :  { %1315 = vmatpush.bf16.msrb.mxu3 %v1662_v43 }
 0xd06   :  { %v1125_v54 = vsel %vm243_vm1, %v1121_v51, 0.0 }
 0xd07   :  { %1126 = vadd.xlane.f32.xlu2 %v1125_v54 }
 0xd09   :  { %v1118_v55 = vpop.f32.mrf.mxu0 }
 0xd0a   :  { %v1119_v56 = vadd.f32 %v1752_v50, %v1118_v55 }
 0xd0c   :  { %v1122_v57 = vadd.f32 %v1119_v56, %v2290_v27  ;;  %v1660_v27 = vld [vmem:[%s2413_s15 + $0x8] sm:$0xff] }
 0xd0d   :  { %1209 = vmatpush.bf16.msrb.mxu1 %v1660_v27 }
 0xd0e   :  { %v1128_v59 = vsel %vm243_vm1, %v1122_v57, 0.0 }
 0xd0f   :  { %1129 = vadd.xlane.f32.xlu1 %v1128_v59  ;;  %v1661_v59 = vld [vmem:[%s2417_s28] sm:$0xff] }
 0xd10   :  { %1316 = vmatpush.bf16.msrb.mxu3 %v1661_v59  ;;  %v1665_v59 = vld [vmem:[%s2074_s23] sm:$0xff] }
 0xd11   :  { %1210 = vmatpush.bf16.msrb.mxu1 %v1659_v4 }
 0xd7a   :  { %v1127_v38 = vpop.xlane.xlu2 %1126 }
 0xd7b   :  { %v1131_v52 = vmul.f32 %v1127_v38, %v2175_v58 }
 0xd7d   :  { %v1133_v60 = vsub.f32 %v1121_v51, %v1131_v52 }
 0xd7f   :  { %v1135_v61 = vmul.f32 %v1133_v60, %v1133_v60 }
 0xd81   :  { %v1137_v62 = vsel %vm243_vm1, %v1135_v61, 0.0 }
 0xd82   :  { %v1130_v26 = vpop.xlane.xlu1 %1129  ;;  %1138 = vadd.xlane.f32.xlu0 %v1137_v62 }
 0xd83   :  { %v1132_v63 = vmul.f32 %v1130_v26, %v2175_v58 }
 0xd85   :  { %v1134_v39 = vsub.f32 %v1122_v57, %v1132_v63 }
 0xd87   :  { %v1136_v0 = vmul.f32 %v1134_v39, %v1134_v39 }
 0xd89   :  { %v1140_v1 = vsel %vm243_vm1, %v1136_v0, 0.0 }
 0xd8a   :  { %1141 = vadd.xlane.f32.xlu2 %v1140_v1 }
 0xdf5   :  { %v1139_v2 = vpop.xlane.xlu0 %1138 }
 0xdf6   :  { %v1143_v48 = vmul.f32 %v1139_v2, %v2175_v58 }
 0xdf8   :  { %v1145_v3 = vadd.f32 1e-12, %v1143_v48 }
 0xdfa   :  { %1814 = vrsqrt.f32 %v1145_v3  ;;  %vm1153_vm11 = vweird.f32 %v1145_v3 }
 0xdfd   :  { %v1142_v33 = vpop.xlane.xlu2 %1141 }
 0xdfe   :  { %v1144_v5 = vmul.f32 %v1142_v33, %v2175_v58 }
 0xe00   :  { %v1815_v6 = vpop.eup %1814  ;;  %v1146_v7 = vadd.f32 1e-12, %v1144_v5 }
 0xe01   :  { %v1148_v8 = vmul.f32 %v1815_v6, %v1145_v3  ;;  %vm1154_vm9 = vweird.f32 %v1815_v6 }
 0xe02   :  { %1816 = vrsqrt.f32 %v1146_v7  ;;  %vm1155_vm12 = vmor %vm1153_vm11, %vm1154_vm9  ;;  %vm1163_vm14 = vweird.f32 %v1146_v7 }
 0xe03   :  { %v1149_v34 = vmul.f32 %v1815_v6, %v1148_v8 }
 0xe05   :  { %v1150_v9 = vmul.f32 0.5, %v1149_v34 }
 0xe07   :  { %v1151_v10 = vsub.f32 1.5, %v1150_v9 }
 0xe08   :  { %v1817_v11 = vpop.eup %1816 }
 0xe09   :  { %v1152_v12 = vmul.f32 %v1815_v6, %v1151_v10  ;;  %v1158_v13 = vmul.f32 %v1817_v11, %v1146_v7  ;;  %vm1164_vm13 = vweird.f32 %v1817_v11 }
 0xe0a   :  { %vm1165_vm15 = vmor %vm1163_vm14, %vm1164_vm13 }
 0xe0b   :  { %v1159_v14 = vmul.f32 %v1817_v11, %v1158_v13  ;;  %v1156_v15 = vsel %vm1155_vm12, %v1815_v6, %v1152_v12  ;;  %vm1442_vm12 = vcmask 17408  }
 0xe0c   :  { %v1167_v19 = vmul.f32 %v1156_v15, %v1133_v60 }
 0xe0d   :  { %v1160_v16 = vmul.f32 0.5, %v1159_v14 }
 0xe0e   :  { %v1172_v23 = vmul.f32 %v1753_v18, %v1167_v19 }
 0xe0f   :  { %v1161_v17 = vsub.f32 1.5, %v1160_v16 }
 0xe10   :  { %v2349_v29 = vadd.f32 %v1754_v22, %v1172_v23 }
 0xe11   :  { %v1162_v20 = vmul.f32 %v1817_v11, %v1161_v17 }
 0xe13   :  { %v1166_v21 = vsel %vm1165_vm15, %v1817_v11, %v1162_v20 }
 0xe14   :  { %v1168_v24 = vmul.f32 %v1166_v21, %v1134_v39 }
 0xe16   :  { %v1173_v28 = vmul.f32 %v1753_v18, %v1168_v24 }
 0xe18   :  { %v2351_v30 = vadd.f32 %v1754_v22, %v1173_v28 }
 0xe1a   :  { %v1179_v31 = vpack.c.bf16 %v2351_v30, %v2349_v29 }
 0xe1c   :  { %1617 = vmatmul.msk.bf16.vlgmr.msrb.gmra.mxu1 %vm243_vm1, %v1179_v31 }
 0xe99   :  { %v1212_v35 = vpop.f32.mrf.mxu1 }
 0xe9a   :  { %v1213_v36 = vadd.f32 %v1755_v32, %v1212_v35 }
 0xe9c   :  { %v1219_v37 = vmul.f32 0.70710677, %v1213_v36  ;;  %v1217_v21 = vmul.f32 0.5, %v1213_v36 }
 0xe9e   :  { %v1225_v40 = vand.u32 2147483647, %v1219_v37  ;;  %vm1221_vm0 = vcmp.lt.f32.partialorder %v1219_v37, 0.0 }
 0xe9f   :  { %v1223_v14 = vsel %vm1221_vm0, -1.0, %v1914_v25 }
 0xea0   :  { %v1227_v41 = vmul.f32 0.3275911, %v1225_v40  ;;  %v1251_v54 = vsub.f32 0.0, %v1225_v40 }
 0xea1   :  { %v1214_v42 = vpop.f32.mrf.mxu1 }
 0xea2   :  { %v1229_v45 = vadd.f32 1.0, %v1227_v41  ;;  %v1215_v46 = vadd.f32 %v1755_v32, %v1214_v42  ;;  %v1253_v38 = vmul.f32 %v1251_v54, %v1225_v40  ;;  %v1756_v32 = vld [vmem:[%s2418_s26] ss:$0 sm:$0xff] }
 0xea4   :  { %1818 = vrcp.f32 %v1229_v45  ;;  %v1220_v47 = vmul.f32 0.70710677, %v1215_v46  ;;  %v1255_v62 = vmul.f32 1.442695, %v1253_v38  ;;  %v1218_v22 = vmul.f32 0.5, %v1215_v46 }
 0xea6   :  { %v1226_v50 = vand.u32 2147483647, %v1220_v47  ;;  %vm1222_vm2 = vcmp.lt.f32.partialorder %v1220_v47, 0.0 }
 0xea7   :  { %v1224_v18 = vsel %vm1222_vm2, -1.0, %v1914_v25 }
 0xea8   :  { %v1228_v53 = vmul.f32 0.3275911, %v1226_v50  ;;  %v1252_v26 = vsub.f32 0.0, %v1226_v50 }
 0xeaa   :  { %v1819_v51 = vpop.eup %1818  ;;  %v1230_v55 = vadd.f32 1.0, %v1228_v53  ;;  %v1254_v27 = vmul.f32 %v1252_v26, %v1226_v50 }
 0xeab   :  { %v1233_v56 = vmul.f32 1.0614054, %v1819_v51 }
 0xeac   :  { %1820 = vrcp.f32 %v1230_v55  ;;  %v1257_v33 = vmul.f32 1.442695, %v1254_v27 }
 0xead   :  { %v1235_v57 = vadd.f32 -1.4531521, %v1233_v56  ;;  %1822 = vpow2.f32 %v1255_v62  ;;  %v1666_v56 = vld [vmem:[%s2074_s23 + $0x8] sm:$0xff] }
 0xeae   :  { %1824 = vpow2.f32 %v1257_v33  ;;  %1416 = vmatpush.bf16.msra.mxu2 %v1666_v56  ;;  %v1757_v33 = vld [vmem:[%s2419_s16] ss:$0 sm:$0xff] }
 0xeaf   :  { %v1237_v52 = vmul.f32 %v1819_v51, %v1235_v57 }
 0xeb1   :  { %v1239_v60 = vadd.f32 1.4214138, %v1237_v52 }
 0xeb2   :  { %v1821_v61 = vpop.eup %1820  ;;  %1417 = vmatpush.bf16.msra.mxu2 %v1665_v59 }
 0xeb3   :  { %v1241_v63 = vmul.f32 %v1819_v51, %v1239_v60  ;;  %v1234_v39 = vmul.f32 1.0614054, %v1821_v61  ;;  %v1823_v7 = vpop.eup %1822 }
 0xeb4   :  { %v1825_v13 = vpop.eup %1824 }
 0xeb5   :  { %v1243_v0 = vadd.f32 -0.28449672, %v1241_v63  ;;  %v1236_v1 = vadd.f32 -1.4531521, %v1234_v39 }
 0xeb7   :  { %v1245_v2 = vmul.f32 %v1819_v51, %v1243_v0  ;;  %v1238_v48 = vmul.f32 %v1821_v61, %v1236_v1 }
 0xeb9   :  { %v1247_v3 = vadd.f32 0.2548296, %v1245_v2  ;;  %v1240_v4 = vadd.f32 1.4214138, %v1238_v48 }
 0xebb   :  { %v1249_v5 = vmul.f32 %v1819_v51, %v1247_v3  ;;  %v1242_v6 = vmul.f32 %v1821_v61, %v1240_v4 }
 0xebd   :  { %v1259_v8 = vmul.f32 %v1823_v7, %v1249_v5  ;;  %v1244_v34 = vadd.f32 -0.28449672, %v1242_v6 }
 0xebf   :  { %v1246_v9 = vmul.f32 %v1821_v61, %v1244_v34  ;;  %v1261_v10 = vsub.f32 1.0, %v1259_v8  ;;  %v1758_v8 = vld [vmem:[%s2069_s12] ss:$0 sm:$0xff]  ;;  %s1915_s12 = smov [#allocation5]  }
 0xec0   :  { %s1449_s23 = sshll.u32 %s1915_s12, 4  ;;  %s1450_s23 = int_to_ptr.vmem [resolvable:$true] %s1449_s23 }
 0xec1   :  { %v1248_v11 = vadd.f32 0.2548296, %v1246_v9  ;;  %v1263_v15 = vmul.f32 %v1261_v10, %v1223_v14 }
 0xec3   :  { %v1250_v12 = vmul.f32 %v1821_v61, %v1248_v11  ;;  %v1265_v19 = vadd.f32 1.0, %v1263_v15  ;;  %v1759_v15 = vld [vmem:[%s2080_s27] ss:$0 sm:$0xff]  ;;  %s1858_s27 = sshra.s32 %s1452_s2, 4  ;;  %s1859_s27 = int_to_ptr.hbm [resolvable:$true] %s1858_s27 }
 0xec4   :  { %s1860_s20 = scalar_lea.hbm %s1859_s27, 2  ;;  %p1863_p6 = scmp.lt.s32.totalorder %s1859_s27, %s2085_s10 }
 0xec5   :  { %v1260_v16 = vmul.f32 %v1825_v13, %v1250_v12  ;;  %v1267_v24 = vmul.f32 %v1265_v19, %v1217_v21  ;;  %p1861_p5 = scmp.ne.s32.totalorder %s1859_s27, %s1860_s20  ;;  %p1864_p7 = scmp.lt.s32.totalorder %s1862_s7, %s1860_s20 }
 0xec7   :  { %v1262_v17 = vsub.f32 1.0, %v1260_v16  ;;  %p1865_p8 = por %p1864_p7, %p1863_p6 }
 0xec9   :  { %v1264_v20 = vmul.f32 %v1262_v17, %v1224_v18  ;;  %p1866_p9 = pnand %p1865_p8, %p1861_p5 }
 0xecb   :  { %v1266_v23 = vadd.f32 1.0, %v1264_v20 }
 0xecd   :  { %v1268_v28 = vmul.f32 %v1266_v23, %v1218_v22 }
 0xecf   :  { %v1269_v31 = vpack.c.bf16 %v1268_v28, %v1267_v24 }
 0xed1   :  { %1634 = vmatmul.msk.bf16.vlgmr.msrb.gmra.mxu3 %vm769_vm3, %v1269_v31 }
 0xf54   :  { %v1318_v35 = vpop.f32.mrf.mxu3 }
 0xf55   :  { %v1319_v37 = vadd.f32 %v1756_v32, %v1318_v35 }
 0xf57   :  { %v1323_v40 = vadd.f32 %v1319_v37, %v2349_v29 }
 0xf59   :  { %v1327_v41 = vsel %vm243_vm1, %v1323_v40, 0.0 }
 0xf5a   :  { %1328 = vadd.xlane.f32.xlu1 %v1327_v41 }
 0xf5c   :  { %v1320_v42 = vpop.f32.mrf.mxu3 }
 0xf5d   :  { %v1321_v25 = vadd.f32 %v1756_v32, %v1320_v42 }
 0xf5f   :  { %v1324_v44 = vadd.f32 %v1321_v25, %v2351_v30 }
 0xf61   :  { %v1330_v36 = vsel %vm243_vm1, %v1324_v44, 0.0 }
 0xf62   :  { %1331 = vadd.xlane.f32.xlu2 %v1330_v36 }
 0xfcd   :  { %v1329_v45 = vpop.xlane.xlu1 %1328 }
 0xfce   :  { %v1333_v46 = vmul.f32 %v1329_v45, %v2175_v58 }
 0xfd0   :  { %v1335_v47 = vsub.f32 %v1323_v40, %v1333_v46 }
 0xfd2   :  { %v1337_v49 = vmul.f32 %v1335_v47, %v1335_v47 }
 0xfd4   :  { %v1339_v50 = vsel %vm243_vm1, %v1337_v49, 0.0 }
 0xfd5   :  { %v1332_v29 = vpop.xlane.xlu2 %1331  ;;  %1340 = vadd.xlane.f32.xlu0 %v1339_v50 }
 0xfd6   :  { %v1334_v53 = vmul.f32 %v1332_v29, %v2175_v58 }
 0xfd8   :  { %v1336_v43 = vsub.f32 %v1324_v44, %v1334_v53 }
 0xfda   :  { %v1338_v51 = vmul.f32 %v1336_v43, %v1336_v43 }
 0xfdc   :  { %v1342_v30 = vsel %vm243_vm1, %v1338_v51, 0.0 }
 0xfdd   :  { %1343 = vadd.xlane.f32.xlu2 %v1342_v30 }
0x1048   :  { %v1341_v54 = vpop.xlane.xlu0 %1340 }
0x1049   :  { %v1345_v55 = vmul.f32 %v1341_v54, %v2175_v58 }
0x104b   :  { %v1347_v57 = vadd.f32 1e-12, %v1345_v55 }
0x104d   :  { %1826 = vrsqrt.f32 %v1347_v57  ;;  %vm1355_vm4 = vweird.f32 %v1347_v57 }
0x1050   :  { %v1344_v38 = vpop.xlane.xlu2 %1343 }
0x1051   :  { %v1346_v52 = vmul.f32 %v1344_v38, %v2175_v58 }
0x1053   :  { %v1827_v60 = vpop.eup %1826  ;;  %v1348_v61 = vadd.f32 1e-12, %v1346_v52 }
0x1054   :  { %v1350_v62 = vmul.f32 %v1827_v60, %v1347_v57  ;;  %vm1356_vm3 = vweird.f32 %v1827_v60 }
0x1055   :  { %1828 = vrsqrt.f32 %v1348_v61  ;;  %vm1357_vm5 = vmor %vm1355_vm4, %vm1356_vm3  ;;  %vm1365_vm7 = vweird.f32 %v1348_v61 }
0x1056   :  { %v1351_v26 = vmul.f32 %v1827_v60, %v1350_v62 }
0x1058   :  { %v1352_v63 = vmul.f32 0.5, %v1351_v26 }
0x105a   :  { %v1353_v39 = vsub.f32 1.5, %v1352_v63 }
0x105b   :  { %v1829_v0 = vpop.eup %1828 }
0x105c   :  { %v1360_v1 = vmul.f32 %v1829_v0, %v1348_v61  ;;  %v1354_v27 = vmul.f32 %v1827_v60, %v1353_v39  ;;  %vm1366_vm6 = vweird.f32 %v1829_v0 }
0x105d   :  { %vm1367_vm8 = vmor %vm1365_vm7, %vm1366_vm6 }
0x105e   :  { %v1361_v2 = vmul.f32 %v1829_v0, %v1360_v1  ;;  %v1358_v3 = vsel %vm1357_vm5, %v1827_v60, %v1354_v27 }
0x105f   :  { %v1369_v5 = vmul.f32 %v1358_v3, %v1335_v47 }
0x1060   :  { %v1362_v48 = vmul.f32 0.5, %v1361_v2 }
0x1061   :  { %v1374_v34 = vmul.f32 %v1757_v33, %v1369_v5 }
0x1062   :  { %v1363_v4 = vsub.f32 1.5, %v1362_v48 }
0x1063   :  { %v1379_v11 = vadd.f32 %v1758_v8, %v1374_v34 }
0x1064   :  { %v1364_v58 = vmul.f32 %v1829_v0, %v1363_v4 }
0x1066   :  { %v1368_v6 = vsel %vm1367_vm8, %v1829_v0, %v1364_v58 }
0x1067   :  { %v1370_v7 = vmul.f32 %v1368_v6, %v1336_v43 }
0x1069   :  { %v1375_v9 = vmul.f32 %v1757_v33, %v1370_v7 }
0x106b   :  { %v1380_v10 = vadd.f32 %v1758_v8, %v1375_v9 }
0x106d   :  { %v1382_v12 = vrot.slane %v1380_v10, 7 }
0x106f   :  { %v1385_v13 = vsel %vm1384_vm10, %v1379_v11, %v1382_v12 }
0x1070   :  { %v1386_v14 = vpack.c.bf16 %v1385_v13, %v1385_v13 }
0x1072   :  { %1643 = vmatmul.msk.bf16.vlgmr.msra.gmra.mxu2 %vm243_vm1, %v1386_v14 }
0x10f5   :  { %v1419_v16 = vpop.f32.mrf.mxu2 }
0x10f6   :  { %v1420_v17 = vadd.f32 %v1759_v15, %v1419_v16 }
0x10f8   :  { %v1644_v18 = vmul.f32 -1.442695, %v1420_v17 }
0x10fa   :  { %1830 = vpow2.f32 %v1644_v18 }
0x10fd   :  { %v1421_v19 = vpop.f32.mrf.mxu2 }
0x1100   :  { %v1831_v20 = vpop.eup %1830 }
0x1101   :  { %v1426_v21 = vadd.f32 1.0, %v1831_v20 }
0x1103   :  { %1832 = vrcp.f32 %v1426_v21  ;;  %v1438_v28 = vand.u32 2147483648, %v1426_v21  ;;  %v1436_v32 = vand.u32 2147483647, %v1426_v21  ;;  %vm1432_vm1 = vweird.f32 %v1426_v21 }
0x1105   :  { %v1439_v37 = vor.u32 1.1754944e-38, %v1438_v28  ;;  %vm1437_vm13 = vcmp.eq.f32.partialorder %v1436_v32, 8.507059e+37 }
0x1109   :  { %v1833_v22 = vpop.eup %1832 }
0x110a   :  { %v1428_v23 = vmul.f32 %v1833_v22, %v1426_v21  ;;  %vm1433_vm9 = vweird.f32 %v1833_v22 }
0x110b   :  { %vm1434_vm11 = vmor %vm1432_vm1, %vm1433_vm9 }
0x110c   :  { %v1429_v24 = vsub.f32 1.0, %v1428_v23 }
0x110e   :  { %v1430_v31 = vmul.f32 %v1833_v22, %v1429_v24 }
0x1110   :  { %v1431_v35 = vadd.f32 %v1833_v22, %v1430_v31 }
0x1112   :  { %v1435_v40 = vsel %vm1434_vm11, %v1833_v22, %v1431_v35 }
0x1113   :  { %v1440_v41 = vsel %vm1437_vm13, %v1439_v37, %v1435_v40 }
0x1114   :  { %1443 = vst.msk [vmem:[#allocation5] sm:$0x3] %vm1442_vm12, %v1440_v41 }
0x1115   :  { %1869 = shalt.err (!%p1866_p9)
}
0x1116   :  { %1454 = dma.vmem_to_hbm [thread:$0]  %s1450_s23, 32, %s1452_s2, [#allocation6]  }
0x1117   :  { %1872 = dma.done.wait [#allocation6], 32  }
0x1118   :  { %1873 = vsyncadd [#allocation6], 4294967264 }
0x1119   :  { %1459 = vsyncpa [#allocation6], 1 }

</bundles_post_ra>
